<compile_context>
chip_gen: v6e
topology: v6e:2x2x1
jax: 0.10.0
libtpu: 0.0.40
codegen_flags: <defaults>
</compile_context>

<pallas_src>
import functools

import jax
import jax.numpy as jnp
from jax.experimental import pallas as pl
from jax.experimental.pallas import tpu as pltpu


def _round_up(x, m):
    return (x + m - 1) // m * m


# ---------------------------------------------------------------------------
# Pallas kernel: one image of Conv2d + bias (+ residual) + LeakyReLU.
# ---------------------------------------------------------------------------
def _conv_rowtap_kernel(x_ref, w_ref, b_ref, *rest, taps, wo_pad, ho, slope,
                        has_res):
    """x_ref : (1, G, hp*wo_pad, K) bf16  repacked input: G row-phases, the
                                          conv-kernel column taps already
                                          stacked into the K (channel) dim.
       w_ref : (n_blk, K, Cout)     bf16  one weight block per row tap.
       b_ref : (1, Cout)            f32   bias.
       rest  : ([res_ref (1, ho*wo_pad, Cout) bf16,]
                 o_ref   (1, ho*wo_pad, Cout) bf16)
       taps  : static tuple of (phase, row_offset, weight_block_index)."""
    if has_res:
        res_ref, o_ref = rest
    else:
        (o_ref,) = rest
    m = ho * wo_pad

    # len(taps) MXU matmuls with K = n_col_taps*Cin.  Row-tap slices start at
    # a*wo_pad (multiple of 16 -> sublane aligned, no relayout copies).
    # Chained accumulation: only len(taps) f32 accumulation passes; on v7x
    # Mosaic can keep the chain in the MXU result buffer.
    acc = None
    for (g, a, wi) in taps:
        xa = x_ref[0, g, a * wo_pad:a * wo_pad + m, :]        # (m, K) bf16
        d = jnp.dot(xa, w_ref[wi], preferred_element_type=jnp.float32)
        acc = d if acc is None else acc + d

    y = acc + b_ref[...]                     # (1, Cout) broadcasts over rows
    if has_res:
        y = y + res_ref[0].astype(jnp.float32)    # fused ResidualBlock skip-add
    y = jnp.where(y >= 0, y, slope * y)            # LeakyReLU in f32
    o_ref[0] = y.astype(o_ref.dtype)               # bf16 activation store


# ---------------------------------------------------------------------------
# Wrapper-side repack (pad + column-tap stack + row-phase split + bf16 cast).
# ---------------------------------------------------------------------------
def _repack_input(x_nhwc, k, stride, pad, ho, wo, wo_pad, stack_all):
    """stack_all=False: stack the k COLUMN taps into channels and split rows
       into `stride` phases -> (n, stride, hp*wo_pad, k*Cin), hp = ho+(k-1)//s.
       stack_all=True : stack all k*k taps (full im2col)
                        -> (n, 1, ho*wo_pad, k*k*Cin)."""
    n, h, w, cin = x_nhwc.shape
    s = stride
    if stack_all:
        hp = ho
        rows_need = s * (ho - 1) + k
        cols_need = s * (wo - 1) + k
        xp = jnp.pad(x_nhwc, ((0, 0), (pad, rows_need - pad - h),
                              (pad, cols_need - pad - w), (0, 0)))
        parts = [xp[:, i:i + s * (ho - 1) + 1:s, j:j + s * (wo - 1) + 1:s, :]
                 for i in range(k) for j in range(k)]
        xg = jnp.concatenate(parts, axis=-1)[:, None]     # (n,1,ho,wo,k*k*cin)
        gdim = 1
    else:
        r = (k - 1) // s
        hp = ho + r
        cols_need = s * (wo - 1) + k
        xp = jnp.pad(x_nhwc, ((0, 0), (pad, s * hp - pad - h),
                              (pad, cols_need - pad - w), (0, 0)))
        parts = [xp[:, :, j:j + s * (wo - 1) + 1:s, :] for j in range(k)]
        xc = jnp.concatenate(parts, axis=-1)              # (n, s*hp, wo, k*cin)
        xg = xc.reshape(n, hp, s, wo, k * cin).transpose(0, 2, 1, 3, 4)
        gdim = s                                          # (n, s, hp, wo, k*cin)
    xg = jnp.pad(xg, ((0, 0),) * 3 + ((0, wo_pad - wo), (0, 0)))
    kdim = xg.shape[-1]
    return xg.reshape(n, gdim, hp * wo_pad, kdim).astype(jnp.bfloat16)


# ---------------------------------------------------------------------------
# Conv2d + bias + LeakyReLU (+ fused residual add): one pallas_call per layer,
# grid over the batch.
# ---------------------------------------------------------------------------
def conv2d_lrelu(x_nhwc, layer, *, stride, slope, residual=None):
    wt, bias = layer["wt"], layer["bias"]      # (k,k,cin,cout) bf16 / (1,cout) f32
    k, _, cin, cout = wt.shape
    pad = k // 2
    n, h, w, c = x_nhwc.shape
    assert c == cin
    s = stride
    ho = (h + 2 * pad - k) // s + 1
    wo = (w + 2 * pad - k) // s + 1
    wo_pad = _round_up(wo, 16)                 # bf16 sublane-tile alignment
    m = ho * wo_pad

    # Full 9-tap stack (single matmul, K = 9*Cin) for the small stride-1
    # residual convs; column-tap stack (k matmuls, K = k*Cin) for the
    # stride-2 downscales (keeps the HBM repack at ~k/s = 2.5x).
    stack_all = (s == 1)
    xg = _repack_input(x_nhwc, k, s, pad, ho, wo, wo_pad, stack_all)
    if stack_all:
        wmat = wt.reshape(1, k * k * cin, cout)
        taps = ((0, 0, 0),)
    else:
        wmat = wt.reshape(k, k * cin, cout)
        taps = tuple((i % s, i // s, i) for i in range(k))

    kernel = functools.partial(_conv_rowtap_kernel, taps=taps, wo_pad=wo_pad,
                               ho=ho, slope=slope,
                               has_res=residual is not None)

    in_specs = [
        pl.BlockSpec((1,) + xg.shape[1:], lambda i: (i, 0, 0, 0)),
        pl.BlockSpec(wmat.shape, lambda i: (0, 0, 0)),
        pl.BlockSpec(bias.shape, lambda i: (0, 0)),
    ]
    args = [xg, wmat, bias]
    if residual is not None:
        res = jnp.pad(residual.astype(jnp.bfloat16),
                      ((0, 0), (0, 0), (0, wo_pad - wo), (0, 0)))
        res = res.reshape(n, m, cout)
        in_specs.append(pl.BlockSpec((1, m, cout), lambda i: (i, 0, 0)))
        args.append(res)

    # Scoped-VMEM limit derived from the real per-step footprint (double
    # buffered inputs/outputs + compiler scratch headroom), capped at 48 MiB.
    blk_bytes = 2 * (xg.shape[1] * xg.shape[2] * xg.shape[3] + wmat.size
                     + m * cout * (2 if residual is not None else 1)) + 4 * cout
    vmem_limit = int(min(max(32 * 1024 * 1024, 6 * blk_bytes),
                         48 * 1024 * 1024))

    out = pl.pallas_call(
        kernel,
        out_shape=jax.ShapeDtypeStruct((n, m, cout), jnp.bfloat16),
        grid=(n,),
        in_specs=in_specs,
        out_specs=pl.BlockSpec((1, m, cout), lambda i: (i, 0, 0)),
        compiler_params=pltpu.CompilerParams(
            dimension_semantics=("parallel",),       # megacore: split batch
            vmem_limit_bytes=vmem_limit),
    )(*args)
    # bf16 activation; drop the width-alignment padding columns.
    return out.reshape(n, ho, wo_pad, cout)[:, :, :wo, :]


# ---------------------------------------------------------------------------
# Encoder
# ---------------------------------------------------------------------------
def _make_conv_layer(key, cin, cout, k):
    # TODO(synk): convolution_aware (FFT-orthogonal) init not reproduced;
    # deterministic He-normal with the same fan-in scaling is used instead.
    fan_in = cin * k * k
    w = jax.random.normal(key, (cout, cin, k, k), jnp.float32) * jnp.sqrt(2.0 / fan_in)
    b = jnp.zeros((cout,), jnp.float32)
    return {
        "w": w,                                              # OIHW f32 (reference)
        "b": b,                                              # (Cout,) f32 (reference)
        "wt": jnp.transpose(w, (2, 3, 1, 0)).astype(jnp.bfloat16),  # (k,k,cin,cout)
        "bias": b.reshape(1, cout),                          # (1,Cout) f32
    }


def init_encoder_params(key, in_channels, num_channels, num_downscale=4,
                        max_channel_multiplier=8, initial_res=False):
    downscales = []
    ic = in_channels
    for down in range(num_downscale):
        oc = num_channels * min(2 ** down, max_channel_multiplier)
        key, sub = jax.random.split(key)
        downscales.append(_make_conv_layer(sub, ic, oc, 5))
        ic = oc
    residual = None
    if initial_res:
        key, k1, k2 = jax.random.split(key, 3)
        residual = (_make_conv_layer(k1, num_channels, num_channels, 3),
                    _make_conv_layer(k2, num_channels, num_channels, 3))
    return {"downscales": downscales, "residual": residual}


def _encoder_forward(x_nchw, params):
    """Encoder.forward (norm=None): per block conv5x5/s2/p2 + LeakyReLU(0.1),
    optional ResidualBlock (two 3x3 convs, fused skip-add) after block 0."""
    x = jnp.transpose(x_nchw, (0, 2, 3, 1))                # NCHW -> NHWC
    for idx, layer in enumerate(params["downscales"]):
        x = conv2d_lrelu(x, layer, stride=2, slope=0.1)
        if idx == 0 and params["residual"] is not None:
            r1, r2 = params["residual"]
            y = conv2d_lrelu(x, r1, stride=1, slope=0.2)
            x = conv2d_lrelu(y, r2, stride=1, slope=0.2, residual=x)
    return jnp.transpose(x, (0, 3, 1, 2)).astype(jnp.float32)   # NHWC -> NCHW


encoder_forward = jax.jit(_encoder_forward)


# ---------------------------------------------------------------------------
# Pure-JAX reference (lax.conv), mirroring the kernel's bf16-in / f32-acc math
# and the bf16 inter-layer activation storage.
# ---------------------------------------------------------------------------
def _lrelu(x, slope):
    return jnp.where(x >= 0, x, slope * x)


def _bf16_round(x):
    return x.astype(jnp.bfloat16).astype(jnp.float32)


def _ref_conv(x, w, b, stride, pad):
    y = jax.lax.conv_general_dilated(
        x.astype(jnp.bfloat16), w.astype(jnp.bfloat16),
        window_strides=(stride, stride), padding=((pad, pad), (pad, pad)),
        dimension_numbers=("NCHW", "OIHW", "NCHW"),
        preferred_element_type=jnp.float32)
    return y + b[None, :, None, None]


def ref_encoder_forward(x, params):
    for idx, layer in enumerate(params["downscales"]):
        x = _bf16_round(_lrelu(_ref_conv(x, layer["w"], layer["b"], 2, 2), 0.1))
        if idx == 0 and params["residual"] is not None:
            r1, r2 = params["residual"]
            y = _bf16_round(_lrelu(_ref_conv(x, r1["w"], r1["b"], 1, 1), 0.2))
            y = _ref_conv(y, r2["w"], r2["b"], 1, 1)
            x = _bf16_round(_lrelu(y + x, 0.2))
    return x


if __name__ == "__main__":
    key = jax.random.PRNGKey(0)
    kx, kp1, kp2 = jax.random.split(key, 3)

    # Small shapes: batch=2, in_channels=4, spatial=16x16.
    x = jax.random.normal(kx, (2, 4, 16, 16), jnp.float32)

    # Default Encoder(4, 8): 4 downscales, channels 8/16/32/64.
    params = init_encoder_params(kp1, in_channels=4, num_channels=8,
                                 num_downscale=4, max_channel_multiplier=8,
                                 initial_res=False)
    out = jax.block_until_ready(encoder_forward(x, params))
    ref = jax.block_until_ready(ref_encoder_forward(x, params))
    assert out.shape == (2, 64, 1, 1), out.shape
    err = float(jnp.max(jnp.abs(out - ref)))
    assert err < 1e-2, f"default config mismatch (max abs err {err})"

    # Encoder with initial_res=True (exercises the fused ResidualBlock path).
    params_r = init_encoder_params(kp2, in_channels=4, num_channels=8,
                                   num_downscale=4, max_channel_multiplier=8,
                                   initial_res=True)
    out_r = jax.block_until_ready(encoder_forward(x, params_r))
    ref_r = jax.block_until_ready(ref_encoder_forward(x, params_r))
    assert out_r.shape == (2, 64, 1, 1), out_r.shape
    err_r = float(jnp.max(jnp.abs(out_r - ref_r)))
    assert err_r < 1e-2, f"initial_res mismatch (max abs err {err_r})"

    print("KERNEL_OK")
</pallas_src>

<mosaic_0001>
module attributes {stable_mosaic.version = 11 : i64} {
  func.func @_conv_rowtap_kernel(%arg0: i32, %arg1: memref<1x2x160x20xbf16, #tpu.memory_space<vmem>>, %arg2: memref<5x20x8xbf16, #tpu.memory_space<vmem>>, %arg3: memref<1x8xf32, #tpu.memory_space<vmem>>, %arg4: memref<1x128x8xbf16, #tpu.memory_space<vmem>>) attributes {dimension_semantics = [#tpu.dimension_semantics<parallel>], iteration_bounds = array<i64: 2>, scalar_prefetch = 0 : i64, scratch_operands = 0 : i64, tpu.core_type = #tpu.core_type<tc>, window_params = [{transform_indices = @transform_0, window_bounds = array<i64: 1, 2, 160, 20>}, {pipeline_mode = #tpu.pipeline_mode<synchronous>, transform_indices = @transform_1, window_bounds = array<i64: 5, 20, 8>}, {pipeline_mode = #tpu.pipeline_mode<synchronous>, transform_indices = @transform_2, window_bounds = array<i64: 1, 8>}, {transform_indices = @transform_3, window_bounds = array<i64: 1, 128, 8>}]} {
    %c0 = arith.constant 0 : index
    %c0_0 = arith.constant 0 : index
    %c0_1 = arith.constant 0 : index
    %c0_2 = arith.constant 0 : index
    %0 = vector.load %arg1[%c0, %c0_0, %c0_1, %c0_2] : memref<1x2x160x20xbf16, #tpu.memory_space<vmem>>, vector<1x1x128x20xbf16>
    %1 = vector.shape_cast %0 : vector<1x1x128x20xbf16> to vector<128x20xbf16>
    %c0_3 = arith.constant 0 : index
    %c0_4 = arith.constant 0 : index
    %c0_5 = arith.constant 0 : index
    %2 = vector.load %arg2[%c0_3, %c0_4, %c0_5] : memref<5x20x8xbf16, #tpu.memory_space<vmem>>, vector<1x20x8xbf16>
    %3 = vector.shape_cast %2 : vector<1x20x8xbf16> to vector<20x8xbf16>
    %cst = arith.constant dense<0.000000e+00> : vector<128x8xf32>
    %4 = tpu.matmul %1, %3, %cst {dimension_numbers = #tpu.dot_dimension_numbers<[1], [0], [0], [1], [0, 0, 1, 1], [], []>} : vector<128x20xbf16>, vector<20x8xbf16>, vector<128x8xf32> -> vector<128x8xf32>
    %c0_6 = arith.constant 0 : index
    %c1 = arith.constant 1 : index
    %c0_7 = arith.constant 0 : index
    %c0_8 = arith.constant 0 : index
    %5 = vector.load %arg1[%c0_6, %c1, %c0_7, %c0_8] : memref<1x2x160x20xbf16, #tpu.memory_space<vmem>>, vector<1x1x128x20xbf16>
    %6 = vector.shape_cast %5 : vector<1x1x128x20xbf16> to vector<128x20xbf16>
    %c1_9 = arith.constant 1 : index
    %c0_10 = arith.constant 0 : index
    %c0_11 = arith.constant 0 : index
    %7 = vector.load %arg2[%c1_9, %c0_10, %c0_11] : memref<5x20x8xbf16, #tpu.memory_space<vmem>>, vector<1x20x8xbf16>
    %8 = vector.shape_cast %7 : vector<1x20x8xbf16> to vector<20x8xbf16>
    %cst_12 = arith.constant dense<0.000000e+00> : vector<128x8xf32>
    %9 = tpu.matmul %6, %8, %cst_12 {dimension_numbers = #tpu.dot_dimension_numbers<[1], [0], [0], [1], [0, 0, 1, 1], [], []>} : vector<128x20xbf16>, vector<20x8xbf16>, vector<128x8xf32> -> vector<128x8xf32>
    %10 = arith.addf %4, %9 : vector<128x8xf32>
    %c0_13 = arith.constant 0 : index
    %c0_14 = arith.constant 0 : index
    %c16 = arith.constant 16 : index
    %c0_15 = arith.constant 0 : index
    %11 = vector.load %arg1[%c0_13, %c0_14, %c16, %c0_15] : memref<1x2x160x20xbf16, #tpu.memory_space<vmem>>, vector<1x1x128x20xbf16>
    %12 = vector.shape_cast %11 : vector<1x1x128x20xbf16> to vector<128x20xbf16>
    %c2 = arith.constant 2 : index
    %c0_16 = arith.constant 0 : index
    %c0_17 = arith.constant 0 : index
    %13 = vector.load %arg2[%c2, %c0_16, %c0_17] : memref<5x20x8xbf16, #tpu.memory_space<vmem>>, vector<1x20x8xbf16>
    %14 = vector.shape_cast %13 : vector<1x20x8xbf16> to vector<20x8xbf16>
    %cst_18 = arith.constant dense<0.000000e+00> : vector<128x8xf32>
    %15 = tpu.matmul %12, %14, %cst_18 {dimension_numbers = #tpu.dot_dimension_numbers<[1], [0], [0], [1], [0, 0, 1, 1], [], []>} : vector<128x20xbf16>, vector<20x8xbf16>, vector<128x8xf32> -> vector<128x8xf32>
    %16 = arith.addf %10, %15 : vector<128x8xf32>
    %c0_19 = arith.constant 0 : index
    %c1_20 = arith.constant 1 : index
    %c16_21 = arith.constant 16 : index
    %c0_22 = arith.constant 0 : index
    %17 = vector.load %arg1[%c0_19, %c1_20, %c16_21, %c0_22] : memref<1x2x160x20xbf16, #tpu.memory_space<vmem>>, vector<1x1x128x20xbf16>
    %18 = vector.shape_cast %17 : vector<1x1x128x20xbf16> to vector<128x20xbf16>
    %c3 = arith.constant 3 : index
    %c0_23 = arith.constant 0 : index
    %c0_24 = arith.constant 0 : index
    %19 = vector.load %arg2[%c3, %c0_23, %c0_24] : memref<5x20x8xbf16, #tpu.memory_space<vmem>>, vector<1x20x8xbf16>
    %20 = vector.shape_cast %19 : vector<1x20x8xbf16> to vector<20x8xbf16>
    %cst_25 = arith.constant dense<0.000000e+00> : vector<128x8xf32>
    %21 = tpu.matmul %18, %20, %cst_25 {dimension_numbers = #tpu.dot_dimension_numbers<[1], [0], [0], [1], [0, 0, 1, 1], [], []>} : vector<128x20xbf16>, vector<20x8xbf16>, vector<128x8xf32> -> vector<128x8xf32>
    %22 = arith.addf %16, %21 : vector<128x8xf32>
    %c0_26 = arith.constant 0 : index
    %c0_27 = arith.constant 0 : index
    %c32 = arith.constant 32 : index
    %c0_28 = arith.constant 0 : index
    %23 = vector.load %arg1[%c0_26, %c0_27, %c32, %c0_28] : memref<1x2x160x20xbf16, #tpu.memory_space<vmem>>, vector<1x1x128x20xbf16>
    %24 = vector.shape_cast %23 : vector<1x1x128x20xbf16> to vector<128x20xbf16>
    %c4 = arith.constant 4 : index
    %c0_29 = arith.constant 0 : index
    %c0_30 = arith.constant 0 : index
    %25 = vector.load %arg2[%c4, %c0_29, %c0_30] : memref<5x20x8xbf16, #tpu.memory_space<vmem>>, vector<1x20x8xbf16>
    %26 = vector.shape_cast %25 : vector<1x20x8xbf16> to vector<20x8xbf16>
    %cst_31 = arith.constant dense<0.000000e+00> : vector<128x8xf32>
    %27 = tpu.matmul %24, %26, %cst_31 {dimension_numbers = #tpu.dot_dimension_numbers<[1], [0], [0], [1], [0, 0, 1, 1], [], []>} : vector<128x20xbf16>, vector<20x8xbf16>, vector<128x8xf32> -> vector<128x8xf32>
    %28 = arith.addf %22, %27 : vector<128x8xf32>
    %c0_32 = arith.constant 0 : index
    %c0_33 = arith.constant 0 : index
    %29 = vector.load %arg3[%c0_32, %c0_33] : memref<1x8xf32, #tpu.memory_space<vmem>>, vector<1x8xf32>
    %30 = vector.broadcast %29 : vector<1x8xf32> to vector<128x8xf32>
    %31 = arith.addf %28, %30 : vector<128x8xf32>
    %cst_34 = arith.constant 0.000000e+00 : f32
    %32 = vector.broadcast %cst_34 : f32 to vector<128x8xf32>
    %33 = arith.cmpf oge, %31, %32 : vector<128x8xf32>
    %cst_35 = arith.constant 1.000000e-01 : f32
    %34 = vector.broadcast %cst_35 : f32 to vector<128x8xf32>
    %35 = arith.mulf %34, %31 : vector<128x8xf32>
    %36 = arith.select %33, %31, %35 : vector<128x8xi1>, vector<128x8xf32>
    %37 = arith.truncf %36 : vector<128x8xf32> to vector<128x8xbf16>
    %c0_36 = arith.constant 0 : index
    %c0_37 = arith.constant 0 : index
    %c0_38 = arith.constant 0 : index
    %38 = vector.load %arg4[%c0_36, %c0_37, %c0_38] : memref<1x128x8xbf16, #tpu.memory_space<vmem>>, vector<1x128x8xbf16>
    %39 = vector.shape_cast %38 : vector<1x128x8xbf16> to vector<128x8xbf16>
    %40 = vector.shape_cast %37 : vector<128x8xbf16> to vector<1x128x8xbf16>
    tpu.vector_store %arg4[%c0_36, %c0_37, %c0_38], %40 {strides = array<i32>} : memref<1x128x8xbf16, #tpu.memory_space<vmem>>, vector<1x128x8xbf16>,
    return
  }
  func.func @transform_0(%arg0: i32) -> (i32, i32, i32, i32) {
    %c0_i32 = arith.constant 0 : i32
    %c0_i32_0 = arith.constant 0 : i32
    %c0_i32_1 = arith.constant 0 : i32
    %c0_i32_2 = arith.constant 0 : i32
    return %arg0, %c0_i32, %c0_i32_0, %c0_i32_1 : i32, i32, i32, i32
  }
  func.func @transform_1(%arg0: i32) -> (i32, i32, i32) {
    %c0_i32 = arith.constant 0 : i32
    %c0_i32_0 = arith.constant 0 : i32
    %c0_i32_1 = arith.constant 0 : i32
    %c0_i32_2 = arith.constant 0 : i32
    return %c0_i32, %c0_i32_0, %c0_i32_1 : i32, i32, i32
  }
  func.func @transform_2(%arg0: i32) -> (i32, i32) {
    %c0_i32 = arith.constant 0 : i32
    %c0_i32_0 = arith.constant 0 : i32
    %c0_i32_1 = arith.constant 0 : i32
    return %c0_i32, %c0_i32_0 : i32, i32
  }
  func.func @transform_3(%arg0: i32) -> (i32, i32, i32) {
    %c0_i32 = arith.constant 0 : i32
    %c0_i32_0 = arith.constant 0 : i32
    %c0_i32_1 = arith.constant 0 : i32
    return %arg0, %c0_i32, %c0_i32_0 : i32, i32, i32
  }
}

module attributes {stable_mosaic.version = 11 : i64} {
  func.func @_conv_rowtap_kernel(%arg0: i32, %arg1: memref<1x2x96x40xbf16, #tpu.memory_space<vmem>>, %arg2: memref<5x40x16xbf16, #tpu.memory_space<vmem>>, %arg3: memref<1x16xf32, #tpu.memory_space<vmem>>, %arg4: memref<1x64x16xbf16, #tpu.memory_space<vmem>>) attributes {dimension_semantics = [#tpu.dimension_semantics<parallel>], iteration_bounds = array<i64: 2>, scalar_prefetch = 0 : i64, scratch_operands = 0 : i64, tpu.core_type = #tpu.core_type<tc>, window_params = [{transform_indices = @transform_0, window_bounds = array<i64: 1, 2, 96, 40>}, {pipeline_mode = #tpu.pipeline_mode<synchronous>, transform_indices = @transform_1, window_bounds = array<i64: 5, 40, 16>}, {pipeline_mode = #tpu.pipeline_mode<synchronous>, transform_indices = @transform_2, window_bounds = array<i64: 1, 16>}, {transform_indices = @transform_3, window_bounds = array<i64: 1, 64, 16>}]} {
    %c0 = arith.constant 0 : index
    %c0_0 = arith.constant 0 : index
    %c0_1 = arith.constant 0 : index
    %c0_2 = arith.constant 0 : index
    %0 = vector.load %arg1[%c0, %c0_0, %c0_1, %c0_2] : memref<1x2x96x40xbf16, #tpu.memory_space<vmem>>, vector<1x1x64x40xbf16>
    %1 = vector.shape_cast %0 : vector<1x1x64x40xbf16> to vector<64x40xbf16>
    %c0_3 = arith.constant 0 : index
    %c0_4 = arith.constant 0 : index
    %c0_5 = arith.constant 0 : index
    %2 = vector.load %arg2[%c0_3, %c0_4, %c0_5] : memref<5x40x16xbf16, #tpu.memory_space<vmem>>, vector<1x40x16xbf16>
    %3 = vector.shape_cast %2 : vector<1x40x16xbf16> to vector<40x16xbf16>
    %cst = arith.constant dense<0.000000e+00> : vector<64x16xf32>
    %4 = tpu.matmul %1, %3, %cst {dimension_numbers = #tpu.dot_dimension_numbers<[1], [0], [0], [1], [0, 0, 1, 1], [], []>} : vector<64x40xbf16>, vector<40x16xbf16>, vector<64x16xf32> -> vector<64x16xf32>
    %c0_6 = arith.constant 0 : index
    %c1 = arith.constant 1 : index
    %c0_7 = arith.constant 0 : index
    %c0_8 = arith.constant 0 : index
    %5 = vector.load %arg1[%c0_6, %c1, %c0_7, %c0_8] : memref<1x2x96x40xbf16, #tpu.memory_space<vmem>>, vector<1x1x64x40xbf16>
    %6 = vector.shape_cast %5 : vector<1x1x64x40xbf16> to vector<64x40xbf16>
    %c1_9 = arith.constant 1 : index
    %c0_10 = arith.constant 0 : index
    %c0_11 = arith.constant 0 : index
    %7 = vector.load %arg2[%c1_9, %c0_10, %c0_11] : memref<5x40x16xbf16, #tpu.memory_space<vmem>>, vector<1x40x16xbf16>
    %8 = vector.shape_cast %7 : vector<1x40x16xbf16> to vector<40x16xbf16>
    %cst_12 = arith.constant dense<0.000000e+00> : vector<64x16xf32>
    %9 = tpu.matmul %6, %8, %cst_12 {dimension_numbers = #tpu.dot_dimension_numbers<[1], [0], [0], [1], [0, 0, 1, 1], [], []>} : vector<64x40xbf16>, vector<40x16xbf16>, vector<64x16xf32> -> vector<64x16xf32>
    %10 = arith.addf %4, %9 : vector<64x16xf32>
    %c0_13 = arith.constant 0 : index
    %c0_14 = arith.constant 0 : index
    %c16 = arith.constant 16 : index
    %c0_15 = arith.constant 0 : index
    %11 = vector.load %arg1[%c0_13, %c0_14, %c16, %c0_15] : memref<1x2x96x40xbf16, #tpu.memory_space<vmem>>, vector<1x1x64x40xbf16>
    %12 = vector.shape_cast %11 : vector<1x1x64x40xbf16> to vector<64x40xbf16>
    %c2 = arith.constant 2 : index
    %c0_16 = arith.constant 0 : index
    %c0_17 = arith.constant 0 : index
    %13 = vector.load %arg2[%c2, %c0_16, %c0_17] : memref<5x40x16xbf16, #tpu.memory_space<vmem>>, vector<1x40x16xbf16>
    %14 = vector.shape_cast %13 : vector<1x40x16xbf16> to vector<40x16xbf16>
    %cst_18 = arith.constant dense<0.000000e+00> : vector<64x16xf32>
    %15 = tpu.matmul %12, %14, %cst_18 {dimension_numbers = #tpu.dot_dimension_numbers<[1], [0], [0], [1], [0, 0, 1, 1], [], []>} : vector<64x40xbf16>, vector<40x16xbf16>, vector<64x16xf32> -> vector<64x16xf32>
    %16 = arith.addf %10, %15 : vector<64x16xf32>
    %c0_19 = arith.constant 0 : index
    %c1_20 = arith.constant 1 : index
    %c16_21 = arith.constant 16 : index
    %c0_22 = arith.constant 0 : index
    %17 = vector.load %arg1[%c0_19, %c1_20, %c16_21, %c0_22] : memref<1x2x96x40xbf16, #tpu.memory_space<vmem>>, vector<1x1x64x40xbf16>
    %18 = vector.shape_cast %17 : vector<1x1x64x40xbf16> to vector<64x40xbf16>
    %c3 = arith.constant 3 : index
    %c0_23 = arith.constant 0 : index
    %c0_24 = arith.constant 0 : index
    %19 = vector.load %arg2[%c3, %c0_23, %c0_24] : memref<5x40x16xbf16, #tpu.memory_space<vmem>>, vector<1x40x16xbf16>
    %20 = vector.shape_cast %19 : vector<1x40x16xbf16> to vector<40x16xbf16>
    %cst_25 = arith.constant dense<0.000000e+00> : vector<64x16xf32>
    %21 = tpu.matmul %18, %20, %cst_25 {dimension_numbers = #tpu.dot_dimension_numbers<[1], [0], [0], [1], [0, 0, 1, 1], [], []>} : vector<64x40xbf16>, vector<40x16xbf16>, vector<64x16xf32> -> vector<64x16xf32>
    %22 = arith.addf %16, %21 : vector<64x16xf32>
    %c0_26 = arith.constant 0 : index
    %c0_27 = arith.constant 0 : index
    %c32 = arith.constant 32 : index
    %c0_28 = arith.constant 0 : index
    %23 = vector.load %arg1[%c0_26, %c0_27, %c32, %c0_28] : memref<1x2x96x40xbf16, #tpu.memory_space<vmem>>, vector<1x1x64x40xbf16>
    %24 = vector.shape_cast %23 : vector<1x1x64x40xbf16> to vector<64x40xbf16>
    %c4 = arith.constant 4 : index
    %c0_29 = arith.constant 0 : index
    %c0_30 = arith.constant 0 : index
    %25 = vector.load %arg2[%c4, %c0_29, %c0_30] : memref<5x40x16xbf16, #tpu.memory_space<vmem>>, vector<1x40x16xbf16>
    %26 = vector.shape_cast %25 : vector<1x40x16xbf16> to vector<40x16xbf16>
    %cst_31 = arith.constant dense<0.000000e+00> : vector<64x16xf32>
    %27 = tpu.matmul %24, %26, %cst_31 {dimension_numbers = #tpu.dot_dimension_numbers<[1], [0], [0], [1], [0, 0, 1, 1], [], []>} : vector<64x40xbf16>, vector<40x16xbf16>, vector<64x16xf32> -> vector<64x16xf32>
    %28 = arith.addf %22, %27 : vector<64x16xf32>
    %c0_32 = arith.constant 0 : index
    %c0_33 = arith.constant 0 : index
    %29 = vector.load %arg3[%c0_32, %c0_33] : memref<1x16xf32, #tpu.memory_space<vmem>>, vector<1x16xf32>
    %30 = vector.broadcast %29 : vector<1x16xf32> to vector<64x16xf32>
    %31 = arith.addf %28, %30 : vector<64x16xf32>
    %cst_34 = arith.constant 0.000000e+00 : f32
    %32 = vector.broadcast %cst_34 : f32 to vector<64x16xf32>
    %33 = arith.cmpf oge, %31, %32 : vector<64x16xf32>
    %cst_35 = arith.constant 1.000000e-01 : f32
    %34 = vector.broadcast %cst_35 : f32 to vector<64x16xf32>
    %35 = arith.mulf %34, %31 : vector<64x16xf32>
    %36 = arith.select %33, %31, %35 : vector<64x16xi1>, vector<64x16xf32>
    %37 = arith.truncf %36 : vector<64x16xf32> to vector<64x16xbf16>
    %c0_36 = arith.constant 0 : index
    %c0_37 = arith.constant 0 : index
    %c0_38 = arith.constant 0 : index
    %38 = vector.load %arg4[%c0_36, %c0_37, %c0_38] : memref<1x64x16xbf16, #tpu.memory_space<vmem>>, vector<1x64x16xbf16>
    %39 = vector.shape_cast %38 : vector<1x64x16xbf16> to vector<64x16xbf16>
    %40 = vector.shape_cast %37 : vector<64x16xbf16> to vector<1x64x16xbf16>
    tpu.vector_store %arg4[%c0_36, %c0_37, %c0_38], %40 {strides = array<i32>} : memref<1x64x16xbf16, #tpu.memory_space<vmem>>, vector<1x64x16xbf16>,
    return
  }
  func.func @transform_0(%arg0: i32) -> (i32, i32, i32, i32) {
    %c0_i32 = arith.constant 0 : i32
    %c0_i32_0 = arith.constant 0 : i32
    %c0_i32_1 = arith.constant 0 : i32
    %c0_i32_2 = arith.constant 0 : i32
    return %arg0, %c0_i32, %c0_i32_0, %c0_i32_1 : i32, i32, i32, i32
  }
  func.func @transform_1(%arg0: i32) -> (i32, i32, i32) {
    %c0_i32 = arith.constant 0 : i32
    %c0_i32_0 = arith.constant 0 : i32
    %c0_i32_1 = arith.constant 0 : i32
    %c0_i32_2 = arith.constant 0 : i32
    return %c0_i32, %c0_i32_0, %c0_i32_1 : i32, i32, i32
  }
  func.func @transform_2(%arg0: i32) -> (i32, i32) {
    %c0_i32 = arith.constant 0 : i32
    %c0_i32_0 = arith.constant 0 : i32
    %c0_i32_1 = arith.constant 0 : i32
    return %c0_i32, %c0_i32_0 : i32, i32
  }
  func.func @transform_3(%arg0: i32) -> (i32, i32, i32) {
    %c0_i32 = arith.constant 0 : i32
    %c0_i32_0 = arith.constant 0 : i32
    %c0_i32_1 = arith.constant 0 : i32
    return %arg0, %c0_i32, %c0_i32_0 : i32, i32, i32
  }
}

module attributes {stable_mosaic.version = 11 : i64} {
  func.func @_conv_rowtap_kernel(%arg0: i32, %arg1: memref<1x2x64x80xbf16, #tpu.memory_space<vmem>>, %arg2: memref<5x80x32xbf16, #tpu.memory_space<vmem>>, %arg3: memref<1x32xf32, #tpu.memory_space<vmem>>, %arg4: memref<1x32x32xbf16, #tpu.memory_space<vmem>>) attributes {dimension_semantics = [#tpu.dimension_semantics<parallel>], iteration_bounds = array<i64: 2>, scalar_prefetch = 0 : i64, scratch_operands = 0 : i64, tpu.core_type = #tpu.core_type<tc>, window_params = [{transform_indices = @transform_0, window_bounds = array<i64: 1, 2, 64, 80>}, {pipeline_mode = #tpu.pipeline_mode<synchronous>, transform_indices = @transform_1, window_bounds = array<i64: 5, 80, 32>}, {pipeline_mode = #tpu.pipeline_mode<synchronous>, transform_indices = @transform_2, window_bounds = array<i64: 1, 32>}, {transform_indices = @transform_3, window_bounds = array<i64: 1, 32, 32>}]} {
    %c0 = arith.constant 0 : index
    %c0_0 = arith.constant 0 : index
    %c0_1 = arith.constant 0 : index
    %c0_2 = arith.constant 0 : index
    %0 = vector.load %arg1[%c0, %c0_0, %c0_1, %c0_2] : memref<1x2x64x80xbf16, #tpu.memory_space<vmem>>, vector<1x1x32x80xbf16>
    %1 = vector.shape_cast %0 : vector<1x1x32x80xbf16> to vector<32x80xbf16>
    %c0_3 = arith.constant 0 : index
    %c0_4 = arith.constant 0 : index
    %c0_5 = arith.constant 0 : index
    %2 = vector.load %arg2[%c0_3, %c0_4, %c0_5] : memref<5x80x32xbf16, #tpu.memory_space<vmem>>, vector<1x80x32xbf16>
    %3 = vector.shape_cast %2 : vector<1x80x32xbf16> to vector<80x32xbf16>
    %cst = arith.constant dense<0.000000e+00> : vector<32x32xf32>
    %4 = tpu.matmul %1, %3, %cst {dimension_numbers = #tpu.dot_dimension_numbers<[1], [0], [0], [1], [0, 0, 1, 1], [], []>} : vector<32x80xbf16>, vector<80x32xbf16>, vector<32x32xf32> -> vector<32x32xf32>
    %c0_6 = arith.constant 0 : index
    %c1 = arith.constant 1 : index
    %c0_7 = arith.constant 0 : index
    %c0_8 = arith.constant 0 : index
    %5 = vector.load %arg1[%c0_6, %c1, %c0_7, %c0_8] : memref<1x2x64x80xbf16, #tpu.memory_space<vmem>>, vector<1x1x32x80xbf16>
    %6 = vector.shape_cast %5 : vector<1x1x32x80xbf16> to vector<32x80xbf16>
    %c1_9 = arith.constant 1 : index
    %c0_10 = arith.constant 0 : index
    %c0_11 = arith.constant 0 : index
    %7 = vector.load %arg2[%c1_9, %c0_10, %c0_11] : memref<5x80x32xbf16, #tpu.memory_space<vmem>>, vector<1x80x32xbf16>
    %8 = vector.shape_cast %7 : vector<1x80x32xbf16> to vector<80x32xbf16>
    %cst_12 = arith.constant dense<0.000000e+00> : vector<32x32xf32>
    %9 = tpu.matmul %6, %8, %cst_12 {dimension_numbers = #tpu.dot_dimension_numbers<[1], [0], [0], [1], [0, 0, 1, 1], [], []>} : vector<32x80xbf16>, vector<80x32xbf16>, vector<32x32xf32> -> vector<32x32xf32>
    %10 = arith.addf %4, %9 : vector<32x32xf32>
    %c0_13 = arith.constant 0 : index
    %c0_14 = arith.constant 0 : index
    %c16 = arith.constant 16 : index
    %c0_15 = arith.constant 0 : index
    %11 = vector.load %arg1[%c0_13, %c0_14, %c16, %c0_15] : memref<1x2x64x80xbf16, #tpu.memory_space<vmem>>, vector<1x1x32x80xbf16>
    %12 = vector.shape_cast %11 : vector<1x1x32x80xbf16> to vector<32x80xbf16>
    %c2 = arith.constant 2 : index
    %c0_16 = arith.constant 0 : index
    %c0_17 = arith.constant 0 : index
    %13 = vector.load %arg2[%c2, %c0_16, %c0_17] : memref<5x80x32xbf16, #tpu.memory_space<vmem>>, vector<1x80x32xbf16>
    %14 = vector.shape_cast %13 : vector<1x80x32xbf16> to vector<80x32xbf16>
    %cst_18 = arith.constant dense<0.000000e+00> : vector<32x32xf32>
    %15 = tpu.matmul %12, %14, %cst_18 {dimension_numbers = #tpu.dot_dimension_numbers<[1], [0], [0], [1], [0, 0, 1, 1], [], []>} : vector<32x80xbf16>, vector<80x32xbf16>, vector<32x32xf32> -> vector<32x32xf32>
    %16 = arith.addf %10, %15 : vector<32x32xf32>
    %c0_19 = arith.constant 0 : index
    %c1_20 = arith.constant 1 : index
    %c16_21 = arith.constant 16 : index
    %c0_22 = arith.constant 0 : index
    %17 = vector.load %arg1[%c0_19, %c1_20, %c16_21, %c0_22] : memref<1x2x64x80xbf16, #tpu.memory_space<vmem>>, vector<1x1x32x80xbf16>
    %18 = vector.shape_cast %17 : vector<1x1x32x80xbf16> to vector<32x80xbf16>
    %c3 = arith.constant 3 : index
    %c0_23 = arith.constant 0 : index
    %c0_24 = arith.constant 0 : index
    %19 = vector.load %arg2[%c3, %c0_23, %c0_24] : memref<5x80x32xbf16, #tpu.memory_space<vmem>>, vector<1x80x32xbf16>
    %20 = vector.shape_cast %19 : vector<1x80x32xbf16> to vector<80x32xbf16>
    %cst_25 = arith.constant dense<0.000000e+00> : vector<32x32xf32>
    %21 = tpu.matmul %18, %20, %cst_25 {dimension_numbers = #tpu.dot_dimension_numbers<[1], [0], [0], [1], [0, 0, 1, 1], [], []>} : vector<32x80xbf16>, vector<80x32xbf16>, vector<32x32xf32> -> vector<32x32xf32>
    %22 = arith.addf %16, %21 : vector<32x32xf32>
    %c0_26 = arith.constant 0 : index
    %c0_27 = arith.constant 0 : index
    %c32 = arith.constant 32 : index
    %c0_28 = arith.constant 0 : index
    %23 = vector.load %arg1[%c0_26, %c0_27, %c32, %c0_28] : memref<1x2x64x80xbf16, #tpu.memory_space<vmem>>, vector<1x1x32x80xbf16>
    %24 = vector.shape_cast %23 : vector<1x1x32x80xbf16> to vector<32x80xbf16>
    %c4 = arith.constant 4 : index
    %c0_29 = arith.constant 0 : index
    %c0_30 = arith.constant 0 : index
    %25 = vector.load %arg2[%c4, %c0_29, %c0_30] : memref<5x80x32xbf16, #tpu.memory_space<vmem>>, vector<1x80x32xbf16>
    %26 = vector.shape_cast %25 : vector<1x80x32xbf16> to vector<80x32xbf16>
    %cst_31 = arith.constant dense<0.000000e+00> : vector<32x32xf32>
    %27 = tpu.matmul %24, %26, %cst_31 {dimension_numbers = #tpu.dot_dimension_numbers<[1], [0], [0], [1], [0, 0, 1, 1], [], []>} : vector<32x80xbf16>, vector<80x32xbf16>, vector<32x32xf32> -> vector<32x32xf32>
    %28 = arith.addf %22, %27 : vector<32x32xf32>
    %c0_32 = arith.constant 0 : index
    %c0_33 = arith.constant 0 : index
    %29 = vector.load %arg3[%c0_32, %c0_33] : memref<1x32xf32, #tpu.memory_space<vmem>>, vector<1x32xf32>
    %30 = vector.broadcast %29 : vector<1x32xf32> to vector<32x32xf32>
    %31 = arith.addf %28, %30 : vector<32x32xf32>
    %cst_34 = arith.constant 0.000000e+00 : f32
    %32 = vector.broadcast %cst_34 : f32 to vector<32x32xf32>
    %33 = arith.cmpf oge, %31, %32 : vector<32x32xf32>
    %cst_35 = arith.constant 1.000000e-01 : f32
    %34 = vector.broadcast %cst_35 : f32 to vector<32x32xf32>
    %35 = arith.mulf %34, %31 : vector<32x32xf32>
    %36 = arith.select %33, %31, %35 : vector<32x32xi1>, vector<32x32xf32>
    %37 = arith.truncf %36 : vector<32x32xf32> to vector<32x32xbf16>
    %c0_36 = arith.constant 0 : index
    %c0_37 = arith.constant 0 : index
    %c0_38 = arith.constant 0 : index
    %38 = vector.load %arg4[%c0_36, %c0_37, %c0_38] : memref<1x32x32xbf16, #tpu.memory_space<vmem>>, vector<1x32x32xbf16>
    %39 = vector.shape_cast %38 : vector<1x32x32xbf16> to vector<32x32xbf16>
    %40 = vector.shape_cast %37 : vector<32x32xbf16> to vector<1x32x32xbf16>
    tpu.vector_store %arg4[%c0_36, %c0_37, %c0_38], %40 {strides = array<i32>} : memref<1x32x32xbf16, #tpu.memory_space<vmem>>, vector<1x32x32xbf16>,
    return
  }
  func.func @transform_0(%arg0: i32) -> (i32, i32, i32, i32) {
    %c0_i32 = arith.constant 0 : i32
    %c0_i32_0 = arith.constant 0 : i32
    %c0_i32_1 = arith.constant 0 : i32
    %c0_i32_2 = arith.constant 0 : i32
    return %arg0, %c0_i32, %c0_i32_0, %c0_i32_1 : i32, i32, i32, i32
  }
  func.func @transform_1(%arg0: i32) -> (i32, i32, i32) {
    %c0_i32 = arith.constant 0 : i32
    %c0_i32_0 = arith.constant 0 : i32
    %c0_i32_1 = arith.constant 0 : i32
    %c0_i32_2 = arith.constant 0 : i32
    return %c0_i32, %c0_i32_0, %c0_i32_1 : i32, i32, i32
  }
  func.func @transform_2(%arg0: i32) -> (i32, i32) {
    %c0_i32 = arith.constant 0 : i32
    %c0_i32_0 = arith.constant 0 : i32
    %c0_i32_1 = arith.constant 0 : i32
    return %c0_i32, %c0_i32_0 : i32, i32
  }
  func.func @transform_3(%arg0: i32) -> (i32, i32, i32) {
    %c0_i32 = arith.constant 0 : i32
    %c0_i32_0 = arith.constant 0 : i32
    %c0_i32_1 = arith.constant 0 : i32
    return %arg0, %c0_i32, %c0_i32_0 : i32, i32, i32
  }
}

module attributes {stable_mosaic.version = 11 : i64} {
  func.func @_conv_rowtap_kernel(%arg0: i32, %arg1: memref<1x2x48x160xbf16, #tpu.memory_space<vmem>>, %arg2: memref<5x160x64xbf16, #tpu.memory_space<vmem>>, %arg3: memref<1x64xf32, #tpu.memory_space<vmem>>, %arg4: memref<1x16x64xbf16, #tpu.memory_space<vmem>>) attributes {dimension_semantics = [#tpu.dimension_semantics<parallel>], iteration_bounds = array<i64: 2>, scalar_prefetch = 0 : i64, scratch_operands = 0 : i64, tpu.core_type = #tpu.core_type<tc>, window_params = [{transform_indices = @transform_0, window_bounds = array<i64: 1, 2, 48, 160>}, {pipeline_mode = #tpu.pipeline_mode<synchronous>, transform_indices = @transform_1, window_bounds = array<i64: 5, 160, 64>}, {pipeline_mode = #tpu.pipeline_mode<synchronous>, transform_indices = @transform_2, window_bounds = array<i64: 1, 64>}, {transform_indices = @transform_3, window_bounds = array<i64: 1, 16, 64>}]} {
    %c0 = arith.constant 0 : index
    %c0_0 = arith.constant 0 : index
    %c0_1 = arith.constant 0 : index
    %c0_2 = arith.constant 0 : index
    %0 = vector.load %arg1[%c0, %c0_0, %c0_1, %c0_2] : memref<1x2x48x160xbf16, #tpu.memory_space<vmem>>, vector<1x1x16x160xbf16>
    %1 = vector.shape_cast %0 : vector<1x1x16x160xbf16> to vector<16x160xbf16>
    %c0_3 = arith.constant 0 : index
    %c0_4 = arith.constant 0 : index
    %c0_5 = arith.constant 0 : index
    %2 = vector.load %arg2[%c0_3, %c0_4, %c0_5] : memref<5x160x64xbf16, #tpu.memory_space<vmem>>, vector<1x160x64xbf16>
    %3 = vector.shape_cast %2 : vector<1x160x64xbf16> to vector<160x64xbf16>
    %cst = arith.constant dense<0.000000e+00> : vector<16x64xf32>
    %4 = tpu.matmul %1, %3, %cst {dimension_numbers = #tpu.dot_dimension_numbers<[1], [0], [0], [1], [0, 0, 1, 1], [], []>} : vector<16x160xbf16>, vector<160x64xbf16>, vector<16x64xf32> -> vector<16x64xf32>
    %c0_6 = arith.constant 0 : index
    %c1 = arith.constant 1 : index
    %c0_7 = arith.constant 0 : index
    %c0_8 = arith.constant 0 : index
    %5 = vector.load %arg1[%c0_6, %c1, %c0_7, %c0_8] : memref<1x2x48x160xbf16, #tpu.memory_space<vmem>>, vector<1x1x16x160xbf16>
    %6 = vector.shape_cast %5 : vector<1x1x16x160xbf16> to vector<16x160xbf16>
    %c1_9 = arith.constant 1 : index
    %c0_10 = arith.constant 0 : index
    %c0_11 = arith.constant 0 : index
    %7 = vector.load %arg2[%c1_9, %c0_10, %c0_11] : memref<5x160x64xbf16, #tpu.memory_space<vmem>>, vector<1x160x64xbf16>
    %8 = vector.shape_cast %7 : vector<1x160x64xbf16> to vector<160x64xbf16>
    %cst_12 = arith.constant dense<0.000000e+00> : vector<16x64xf32>
    %9 = tpu.matmul %6, %8, %cst_12 {dimension_numbers = #tpu.dot_dimension_numbers<[1], [0], [0], [1], [0, 0, 1, 1], [], []>} : vector<16x160xbf16>, vector<160x64xbf16>, vector<16x64xf32> -> vector<16x64xf32>
    %10 = arith.addf %4, %9 : vector<16x64xf32>
    %c0_13 = arith.constant 0 : index
    %c0_14 = arith.constant 0 : index
    %c16 = arith.constant 16 : index
    %c0_15 = arith.constant 0 : index
    %11 = vector.load %arg1[%c0_13, %c0_14, %c16, %c0_15] : memref<1x2x48x160xbf16, #tpu.memory_space<vmem>>, vector<1x1x16x160xbf16>
    %12 = vector.shape_cast %11 : vector<1x1x16x160xbf16> to vector<16x160xbf16>
    %c2 = arith.constant 2 : index
    %c0_16 = arith.constant 0 : index
    %c0_17 = arith.constant 0 : index
    %13 = vector.load %arg2[%c2, %c0_16, %c0_17] : memref<5x160x64xbf16, #tpu.memory_space<vmem>>, vector<1x160x64xbf16>
    %14 = vector.shape_cast %13 : vector<1x160x64xbf16> to vector<160x64xbf16>
    %cst_18 = arith.constant dense<0.000000e+00> : vector<16x64xf32>
    %15 = tpu.matmul %12, %14, %cst_18 {dimension_numbers = #tpu.dot_dimension_numbers<[1], [0], [0], [1], [0, 0, 1, 1], [], []>} : vector<16x160xbf16>, vector<160x64xbf16>, vector<16x64xf32> -> vector<16x64xf32>
    %16 = arith.addf %10, %15 : vector<16x64xf32>
    %c0_19 = arith.constant 0 : index
    %c1_20 = arith.constant 1 : index
    %c16_21 = arith.constant 16 : index
    %c0_22 = arith.constant 0 : index
    %17 = vector.load %arg1[%c0_19, %c1_20, %c16_21, %c0_22] : memref<1x2x48x160xbf16, #tpu.memory_space<vmem>>, vector<1x1x16x160xbf16>
    %18 = vector.shape_cast %17 : vector<1x1x16x160xbf16> to vector<16x160xbf16>
    %c3 = arith.constant 3 : index
    %c0_23 = arith.constant 0 : index
    %c0_24 = arith.constant 0 : index
    %19 = vector.load %arg2[%c3, %c0_23, %c0_24] : memref<5x160x64xbf16, #tpu.memory_space<vmem>>, vector<1x160x64xbf16>
    %20 = vector.shape_cast %19 : vector<1x160x64xbf16> to vector<160x64xbf16>
    %cst_25 = arith.constant dense<0.000000e+00> : vector<16x64xf32>
    %21 = tpu.matmul %18, %20, %cst_25 {dimension_numbers = #tpu.dot_dimension_numbers<[1], [0], [0], [1], [0, 0, 1, 1], [], []>} : vector<16x160xbf16>, vector<160x64xbf16>, vector<16x64xf32> -> vector<16x64xf32>
    %22 = arith.addf %16, %21 : vector<16x64xf32>
    %c0_26 = arith.constant 0 : index
    %c0_27 = arith.constant 0 : index
    %c32 = arith.constant 32 : index
    %c0_28 = arith.constant 0 : index
    %23 = vector.load %arg1[%c0_26, %c0_27, %c32, %c0_28] : memref<1x2x48x160xbf16, #tpu.memory_space<vmem>>, vector<1x1x16x160xbf16>
    %24 = vector.shape_cast %23 : vector<1x1x16x160xbf16> to vector<16x160xbf16>
    %c4 = arith.constant 4 : index
    %c0_29 = arith.constant 0 : index
    %c0_30 = arith.constant 0 : index
    %25 = vector.load %arg2[%c4, %c0_29, %c0_30] : memref<5x160x64xbf16, #tpu.memory_space<vmem>>, vector<1x160x64xbf16>
    %26 = vector.shape_cast %25 : vector<1x160x64xbf16> to vector<160x64xbf16>
    %cst_31 = arith.constant dense<0.000000e+00> : vector<16x64xf32>
    %27 = tpu.matmul %24, %26, %cst_31 {dimension_numbers = #tpu.dot_dimension_numbers<[1], [0], [0], [1], [0, 0, 1, 1], [], []>} : vector<16x160xbf16>, vector<160x64xbf16>, vector<16x64xf32> -> vector<16x64xf32>
    %28 = arith.addf %22, %27 : vector<16x64xf32>
    %c0_32 = arith.constant 0 : index
    %c0_33 = arith.constant 0 : index
    %29 = vector.load %arg3[%c0_32, %c0_33] : memref<1x64xf32, #tpu.memory_space<vmem>>, vector<1x64xf32>
    %30 = vector.broadcast %29 : vector<1x64xf32> to vector<16x64xf32>
    %31 = arith.addf %28, %30 : vector<16x64xf32>
    %cst_34 = arith.constant 0.000000e+00 : f32
    %32 = vector.broadcast %cst_34 : f32 to vector<16x64xf32>
    %33 = arith.cmpf oge, %31, %32 : vector<16x64xf32>
    %cst_35 = arith.constant 1.000000e-01 : f32
    %34 = vector.broadcast %cst_35 : f32 to vector<16x64xf32>
    %35 = arith.mulf %34, %31 : vector<16x64xf32>
    %36 = arith.select %33, %31, %35 : vector<16x64xi1>, vector<16x64xf32>
    %37 = arith.truncf %36 : vector<16x64xf32> to vector<16x64xbf16>
    %c0_36 = arith.constant 0 : index
    %c0_37 = arith.constant 0 : index
    %c0_38 = arith.constant 0 : index
    %38 = vector.load %arg4[%c0_36, %c0_37, %c0_38] : memref<1x16x64xbf16, #tpu.memory_space<vmem>>, vector<1x16x64xbf16>
    %39 = vector.shape_cast %38 : vector<1x16x64xbf16> to vector<16x64xbf16>
    %40 = vector.shape_cast %37 : vector<16x64xbf16> to vector<1x16x64xbf16>
    tpu.vector_store %arg4[%c0_36, %c0_37, %c0_38], %40 {strides = array<i32>} : memref<1x16x64xbf16, #tpu.memory_space<vmem>>, vector<1x16x64xbf16>,
    return
  }
  func.func @transform_0(%arg0: i32) -> (i32, i32, i32, i32) {
    %c0_i32 = arith.constant 0 : i32
    %c0_i32_0 = arith.constant 0 : i32
    %c0_i32_1 = arith.constant 0 : i32
    %c0_i32_2 = arith.constant 0 : i32
    return %arg0, %c0_i32, %c0_i32_0, %c0_i32_1 : i32, i32, i32, i32
  }
  func.func @transform_1(%arg0: i32) -> (i32, i32, i32) {
    %c0_i32 = arith.constant 0 : i32
    %c0_i32_0 = arith.constant 0 : i32
    %c0_i32_1 = arith.constant 0 : i32
    %c0_i32_2 = arith.constant 0 : i32
    return %c0_i32, %c0_i32_0, %c0_i32_1 : i32, i32, i32
  }
  func.func @transform_2(%arg0: i32) -> (i32, i32) {
    %c0_i32 = arith.constant 0 : i32
    %c0_i32_0 = arith.constant 0 : i32
    %c0_i32_1 = arith.constant 0 : i32
    return %c0_i32, %c0_i32_0 : i32, i32
  }
  func.func @transform_3(%arg0: i32) -> (i32, i32, i32) {
    %c0_i32 = arith.constant 0 : i32
    %c0_i32_0 = arith.constant 0 : i32
    %c0_i32_1 = arith.constant 0 : i32
    return %arg0, %c0_i32, %c0_i32_0 : i32, i32, i32
  }
}

</mosaic_0001>

<bundles_post_ra>
// kernel: _encoder_forward.5
= control target key start
LH: loop header
LB: loop body
LE: loop exit
PB: predicated region body
PF: predicated region fallthrough
CT: control target
= control target key end

     0   :  { %s1286_s12 = smov 0   ;;  %s1426_s0 = inlined_call_operand.vmem [shape: bf16[2,2,96,40], index: 0, kind: input, shape index: {}]   ;;  %s1427_s1 = inlined_call_operand.vmem [shape: bf16[5,40,16], index: 1, kind: input, shape index: {}]   ;;  %s1428_s2 = inlined_call_operand.vmem [shape: f32[1,16], index: 2, kind: input, shape index: {}]   ;;  %s1429_s3 = inlined_call_operand.vmem [shape: bf16[2,64,16], index: 3, kind: output, shape index: {}]  }
   0x1 LB: > { %s978_s13 = sadd.s32 4294967295, %s1264_s12   ;;  %p982_p0 = scmp.ge.s32.totalorder %s1264_s12, 1  ;;  %s1264_s12 = sphi %s1286_s12, %s13_s12  }
   0x2   : > { %p137_p1 = scmp.lt.s32.totalorder %s1264_s12, 3 }
   0x4   : > { %p138_p2 = pnand %p982_p0, %p137_p1 }
   0x5   : > { %p161_p3 = scmp.lt.s32.totalorder (!%p138_p2), %s978_s13, 1 }
   0x6   : > { %141 = sbr.rel (%p138_p2) target bundleno = 269 (0x10d), region = 32 }
   0xb   : > { %v1223_v0 = vld [vmem:[%s1427_s1 + $0x24] ss:$0 sps:$4 sm:$0xff]   ;;  %vm248_vm0 = vcmask 1043456   ;;  %v1225_v1 = vld [vmem:[%s1427_s1 + $0x1c] sm:$0xff]   ;;  %v1224_v2 = vld [vmem:[%s1427_s1 + $0x10] ss:$0 sps:$4 sm:$0xff]  }
   0xc   : > { %1208 = vmatprep.subr.msk.bf16.mxu0 %vm248_vm0, %v1223_v0  ;;  %v250_v3 = vsel %vm248_vm0, %v1223_v0, 0  ;;  %v1226_v4 = vld [vmem:[%s1427_s1 + $0x8] sm:$0xff]   ;;  %1209 = vmatprep.subr.msk.bf16.mxu1 %vm248_vm0, %v1224_v2  ;;  %v365_v5 = vsel %vm248_vm0, %v1224_v2, 0  ;;  %v1227_v6 = vld [vmem:[%s1427_s1 + $0x14] sm:$0xff]   ;;  %v1228_v7 = vld [vmem:[%s1427_s1] sm:$0xff]   ;;  %s1431_s13 = smov (!%p161_p3, %s978_s13), 1 }
   0xd   : > { %1133 = vmatpush3.bf16.msra.mxu0 %v250_v3  ;;  %1147 = vmatpush3.bf16.msra.mxu1 %v365_v5  ;;  %v1233_v8 = vld [vmem:[%s1427_s1 + $0x38] ss:$0 sps:$4 sm:$0xff]   ;;  %v1234_v9 = vld [vmem:[%s1427_s1 + $0x4c] ss:$0 sps:$4 sm:$0xff]   ;;  %s1214_s30 = smul.u32 96, %s1431_s13  ;;  %vm235_vm1 = vcmask 326656  }
   0xe   : > { %1134 = vmatprep.subr.bf16.mxu0 %v1225_v1  ;;  %1148 = vmatprep.subr.bf16.mxu1 %v1226_v4  ;;  %v1235_v11 = vld [vmem:[%s1427_s1 + $0x30] sm:$0xff]   ;;  %v1236_v13 = vld [vmem:[%s1427_s1 + $0x44] sm:$0xff]   ;;  %v494_v15 = vsel %vm248_vm0, %v1233_v8, 0  ;;  %v631_v17 = vsel %vm248_vm0, %v1234_v9, 0  ;;  %v1242_v21 = vld [vmem:[%s1427_s1 + $0x3c] sm:$0xff]   ;;  %vm914_vm2 = vcmask 125952  }
   0xf   : > { %s1328_s6 = scalar_lea.vmem %s1426_s0, %s1214_s30  ;;  %v1241_v20 = vld [vmem:[%s1427_s1 + $0x28] sm:$0xff]   ;;  %v1247_v24 = vld [vmem:[%s1427_s1 + $0x60] ss:$0 sps:$4 sm:$0xff]   ;;  %v1248_v30 = vld [vmem:[%s1427_s1 + $0x58] sm:$0xff]   ;;  %s1088_s25 = sshll.u32 %s1431_s13, 5 }
  0x10   : > { %v1229_v10 = vld [vmem:[%s1328_s6 + $0x30] sm:$0xff]   ;;  %v1230_v12 = vld [vmem:[%s1328_s6] sm:$0xff]   ;;  %v1231_v14 = vld [vmem:[%s1328_s6 + $0x38] sm:$0xff]   ;;  %v768_v29 = vsel %vm248_vm0, %v1247_v24, 0  ;;  %s1405_s28 = scalar_lea.vmem %s1429_s3, %s1088_s25 }
  0x11   : > { %1135 = vmatpush3.bf16.msra.mxu0 %v1225_v1  ;;  %1149 = vmatpush3.bf16.msra.mxu1 %v1226_v4  ;;  %v1232_v16 = vld [vmem:[%s1328_s6 + $0x8] sm:$0xff]   ;;  %v1237_v18 = vld [vmem:[%s1328_s6 + $0x40] sm:$0xff]   ;;  %v1238_v19 = vld [vmem:[%s1328_s6 + $0x10] sm:$0xff]  }
  0x12   : > { %1136 = vmatprep.subr.bf16.mxu0 %v1227_v6  ;;  %1150 = vmatprep.subr.bf16.mxu1 %v1228_v7  ;;  %v1239_v22 = vld [vmem:[%s1328_s6 + $0x48] sm:$0xff]   ;;  %v1240_v23 = vld [vmem:[%s1328_s6 + $0x18] sm:$0xff]   ;;  %v1245_v27 = vld [vmem:[%s1328_s6 + $0x10] sm:$0xff]  }
  0x13   : > { %1138 = vmatprep.mubr.msk.bf16.mxu0 %vm235_vm1, %v1229_v10  ;;  %1152 = vmatprep.mubr.msk.bf16.mxu1 %vm235_vm1, %v1230_v12  ;;  %v1243_v25 = vld [vmem:[%s1328_s6 + $0x8] sm:$0xff]   ;;  %v1244_v26 = vld [vmem:[%s1328_s6 + $0x38] sm:$0xff]   ;;  %v1246_v28 = vld [vmem:[%s1328_s6 + $0x40] sm:$0xff]  }
  0x14   : > { %v1249_v31 = vld [vmem:[%s1328_s6 + $0x18] sm:$0xff]   ;;  %v1250_v32 = vld [vmem:[%s1328_s6 + $0x48] sm:$0xff]   ;;  %v1253_v33 = vld [vmem:[%s1427_s1 + $0x50] sm:$0xff]  }
  0x15   : > { %1137 = vmatpush3.bf16.msra.mxu0 %v1227_v6  ;;  %1151 = vmatpush3.bf16.msra.mxu1 %v1228_v7  ;;  %v1251_v34 = vld [vmem:[%s1328_s6 + $0x20] sm:$0xff]   ;;  %v1252_v35 = vld [vmem:[%s1328_s6 + $0x50] sm:$0xff]   ;;  %v1256_v38 = vld [vmem:[%s1328_s6 + $0x18] sm:$0xff]  }
  0x16   : > { %1210 = vmatprep.subr.msk.bf16.mxu0 %vm248_vm0, %v1233_v8  ;;  %1211 = vmatprep.subr.msk.bf16.mxu1 %vm248_vm0, %v1234_v9  ;;  %v1254_v36 = vld [vmem:[%s1328_s6 + $0x10] sm:$0xff]   ;;  %v1255_v37 = vld [vmem:[%s1328_s6 + $0x20] sm:$0xff]   ;;  %v1257_v39 = vld [vmem:[%s1328_s6 + $0x28] sm:$0xff]  }
  0x18   : > { %1139 = vmatmul.mubr.msk.bf16.vlgmr.msra.gmra.mxu0 %vm235_vm1, %v1231_v14  ;;  %1153 = vmatmul.mubr.msk.bf16.vlgmr.msra.gmra.mxu1 %vm235_vm1, %v1232_v16 }
  0x19   : > { %1161 = vmatpush3.bf16.msra.mxu0 %v494_v15  ;;  %1175 = vmatpush3.bf16.msra.mxu1 %v631_v17 }
  0x1a   : > { %1162 = vmatprep.subr.bf16.mxu0 %v1235_v11  ;;  %1176 = vmatprep.subr.bf16.mxu1 %v1236_v13 }
  0x1b   : > { %1142 = vmatprep.mubr.msk.bf16.mxu0 %vm235_vm1, %v1237_v18  ;;  %1156 = vmatprep.mubr.msk.bf16.mxu1 %vm235_vm1, %v1238_v19 }
  0x1d   : > { %1163 = vmatpush3.bf16.msra.mxu0 %v1235_v11  ;;  %1177 = vmatpush3.bf16.msra.mxu1 %v1236_v13 }
  0x1e   : > { %1164 = vmatprep.subr.bf16.mxu0 %v1241_v20  ;;  %1178 = vmatprep.subr.bf16.mxu1 %v1242_v21 }
  0x20   : > { %1143 = vmatmul.mubr.msk.bf16.gmra.mxu0 %vm235_vm1, %v1239_v22  ;;  %1157 = vmatmul.mubr.msk.bf16.gmra.mxu1 %vm235_vm1, %v1240_v23 }
  0x21   : > { %1165 = vmatpush3.bf16.msra.mxu0 %v1241_v20  ;;  %1179 = vmatpush3.bf16.msra.mxu1 %v1242_v21 }
  0x22   : > { %1166 = vmatprep.mubr.msk.bf16.mxu0 %vm235_vm1, %v1243_v25  ;;  %1180 = vmatprep.mubr.msk.bf16.mxu1 %vm235_vm1, %v1244_v26 }
  0x23   : > { %1212 = vmatprep.subr.msk.bf16.mxu0 %vm248_vm0, %v1247_v24  ;;  %1213 = vmatprep.subr.msk.bf16.mxu1 %vm248_vm0, %v1247_v24 }
  0x28   : > { %1167 = vmatmul.mubr.msk.bf16.vlgmr.msra.gmra.mxu0 %vm235_vm1, %v1245_v27  ;;  %1181 = vmatmul.mubr.msk.bf16.vlgmr.msra.gmra.mxu1 %vm235_vm1, %v1246_v28  ;;  %v1077_v27 = vld [vmem:[%s1428_s2] ss:$0 sm:$0xff] }
  0x29   : > { %1189 = vmatpush3.bf16.msra.mxu0 %v768_v29  ;;  %1205 = vmatpush3.bf16.msra.mxu1 %v768_v29 }
  0x2a   : > { %1190 = vmatprep.subr.bf16.mxu0 %v1248_v30  ;;  %1203 = vmatprep.subr.bf16.mxu1 %v1248_v30 }
  0x2b   : > { %1170 = vmatprep.mubr.msk.bf16.mxu0 %vm235_vm1, %v1249_v31  ;;  %1184 = vmatprep.mubr.msk.bf16.mxu1 %vm235_vm1, %v1250_v32 }
  0x2d   : > { %1191 = vmatpush3.bf16.msra.mxu0 %v1248_v30  ;;  %1206 = vmatpush3.bf16.msra.mxu1 %v1248_v30 }
  0x2e   : > { %1192 = vmatprep.subr.bf16.mxu0 %v1253_v33  ;;  %1204 = vmatprep.subr.bf16.mxu1 %v1253_v33 }
  0x30   : > { %1171 = vmatmul.mubr.msk.bf16.gmra.mxu0 %vm235_vm1, %v1251_v34  ;;  %1185 = vmatmul.mubr.msk.bf16.gmra.mxu1 %vm235_vm1, %v1252_v35 }
  0x31   : > { %1193 = vmatpush3.bf16.msra.mxu0 %v1253_v33  ;;  %1207 = vmatpush3.bf16.msra.mxu1 %v1253_v33 }
  0x32   : > { %1194 = vmatprep.mubr.msk.bf16.mxu0 %vm235_vm1, %v1254_v36  ;;  %1198 = vmatprep.mubr.msk.bf16.mxu1 %vm235_vm1, %v1255_v37 }
  0x38   : > { %1195 = vmatmul.mubr.msk.bf16.vlgmr.msra.gmra.mxu0 %vm235_vm1, %v1256_v38  ;;  %1199 = vmatmul.mubr.msk.bf16.vlgmr.msra.gmra.mxu1 %vm235_vm1, %v1257_v39 }
  0xd8   : > { %v1140_v40 = vpop.f32.mrf.mxu0  ;;  %v1154_v41 = vpop.f32.mrf.mxu1 }
  0xd9   : > { %v410_v1 = vadd.f32 %v1154_v41, %v1140_v40 }
  0xda   : > { %v286_v42 = vpop.f32.mrf.mxu0  ;;  %v401_v43 = vpop.f32.mrf.mxu1 }
  0xdb   : > { %v402_v5 = vadd.f32 %v401_v43, %v286_v42 }
  0xdc   : > { %v1141_v44 = vpop.f32.mrf.mxu0  ;;  %v1155_v45 = vpop.f32.mrf.mxu1 }
  0xdd   : > { %v413_v11 = vadd.f32 %v1155_v45, %v1141_v44 }
  0xde   : > { %v289_v46 = vpop.f32.mrf.mxu0  ;;  %v404_v47 = vpop.f32.mrf.mxu1 }
  0xdf   : > { %v405_v12 = vadd.f32 %v404_v47, %v289_v46 }
  0xe0   : > { %v1144_v48 = vpop.f32.mrf.mxu0  ;;  %v1158_v49 = vpop.f32.mrf.mxu1 }
  0xe1   : > { %v426_v3 = vadd.f32 %v1158_v49, %v1144_v48 }
  0xe2   : > { %v302_v50 = vpop.f32.mrf.mxu0  ;;  %v417_v51 = vpop.f32.mrf.mxu1 }
  0xe3   : > { %v418_v8 = vadd.f32 %v417_v51, %v302_v50 }
  0xe4   : > { %v1145_v52 = vpop.f32.mrf.mxu0  ;;  %v1159_v53 = vpop.f32.mrf.mxu1 }
  0xe5   : > { %v429_v15 = vadd.f32 %v1159_v53, %v1145_v52 }
  0xe6   : > { %v305_v54 = vpop.f32.mrf.mxu0  ;;  %v420_v55 = vpop.f32.mrf.mxu1 }
  0xe7   : > { %v421_v16 = vadd.f32 %v420_v55, %v305_v54 }
  0xe8   : > { %v1168_v56 = vpop.f32.mrf.mxu0  ;;  %v1182_v57 = vpop.f32.mrf.mxu1 }
  0xe9   : > { %v563_v6 = vadd.f32 %v1168_v56, %v410_v1 }
  0xea   : > { %v530_v58 = vpop.f32.mrf.mxu0  ;;  %v667_v59 = vpop.f32.mrf.mxu1 }
  0xeb   : > { %v561_v13 = vadd.f32 %v530_v58, %v402_v5  ;;  %v700_v19 = vadd.f32 %v1182_v57, %v563_v6 }
  0xec   : > { %v1169_v60 = vpop.f32.mrf.mxu0  ;;  %v1183_v61 = vpop.f32.mrf.mxu1 }
  0xed   : > { %v564_v20 = vadd.f32 %v1169_v60, %v413_v11  ;;  %v698_v28 = vadd.f32 %v667_v59, %v561_v13 }
  0xee   : > { %v533_v62 = vpop.f32.mrf.mxu0  ;;  %v670_v63 = vpop.f32.mrf.mxu1 }
  0xef   : > { %v562_v21 = vadd.f32 %v533_v62, %v405_v12  ;;  %v701_v34 = vadd.f32 %v1183_v61, %v564_v20 }
  0xf0   : > { %v1172_v0 = vpop.f32.mrf.mxu0  ;;  %v1186_v2 = vpop.f32.mrf.mxu1 }
  0xf1   : > { %v567_v9 = vadd.f32 %v1172_v0, %v426_v3  ;;  %v699_v35 = vadd.f32 %v670_v63, %v562_v21 }
  0xf2   : > { %v546_v4 = vpop.f32.mrf.mxu0  ;;  %v683_v7 = vpop.f32.mrf.mxu1 }
  0xf3   : > { %v565_v17 = vadd.f32 %v546_v4, %v418_v8  ;;  %v704_v23 = vadd.f32 %v1186_v2, %v567_v9 }
  0xf4   : > { %v1173_v10 = vpop.f32.mrf.mxu0  ;;  %v1187_v14 = vpop.f32.mrf.mxu1 }
  0xf5   : > { %v568_v24 = vadd.f32 %v1173_v10, %v429_v15  ;;  %v702_v31 = vadd.f32 %v683_v7, %v565_v17 }
  0xf6   : > { %v549_v18 = vpop.f32.mrf.mxu0  ;;  %v686_v22 = vpop.f32.mrf.mxu1 }
  0xf7   : > { %v566_v25 = vadd.f32 %v549_v18, %v421_v16  ;;  %v705_v39 = vadd.f32 %v1187_v14, %v568_v24 }
  0xf8   : > { %v1196_v26 = vpop.f32.mrf.mxu0  ;;  %v1200_v30 = vpop.f32.mrf.mxu1 }
  0xf9   : > { %v837_v29 = vadd.f32 %v1196_v26, %v700_v19  ;;  %v841_v32 = vadd.f32 %v1200_v30, %v704_v23  ;;  %v703_v40 = vadd.f32 %v686_v22, %v566_v25 }
  0xfa   : > { %v804_v33 = vpop.f32.mrf.mxu0  ;;  %v820_v38 = vpop.f32.mrf.mxu1 }
  0xfb   : > { %v852_v36 = vadd.f32 %v1077_v27, %v837_v29  ;;  %v835_v37 = vadd.f32 %v804_v33, %v698_v28  ;;  %v856_v41 = vadd.f32 %v1077_v27, %v841_v32  ;;  %v839_v42 = vadd.f32 %v820_v38, %v702_v31 }
  0xfc   : > { %v1197_v43 = vpop.f32.mrf.mxu0  ;;  %v1201_v47 = vpop.f32.mrf.mxu1 }
  0xfd   : > { %vm860_vm3 = vcmp.ge.f32.partialorder %v852_v36, 0.0  ;;  %v868_v44 = vmul.f32 0.1, %v852_v36  ;;  %v850_v45 = vadd.f32 %v1077_v27, %v835_v37  ;;  %v838_v46 = vadd.f32 %v1197_v43, %v701_v34 }
  0xfe   : > { %vm864_vm4 = vcmp.ge.f32.partialorder %v856_v41, 0.0  ;;  %v872_v48 = vmul.f32 0.1, %v856_v41  ;;  %v854_v49 = vadd.f32 %v1077_v27, %v839_v42  ;;  %v842_v50 = vadd.f32 %v1201_v47, %v705_v39  ;;  %v807_v54 = vpop.f32.mrf.mxu0  ;;  %v823_v58 = vpop.f32.mrf.mxu1 }
  0xff   : > { %v876_v51 = vsel %vm860_vm3, %v852_v36, %v868_v44  ;;  %vm858_vm5 = vcmp.ge.f32.partialorder %v850_v45, 0.0  ;;  %v866_v52 = vmul.f32 0.1, %v850_v45  ;;  %v853_v53 = vadd.f32 %v1077_v27, %v838_v46 }
 0x100   : > { %v1091_v55 = vpack.c.bf16 %v876_v51, %v876_v51  ;;  %v880_v56 = vsel %vm864_vm4, %v856_v41, %v872_v48  ;;  %vm862_vm6 = vcmp.ge.f32.partialorder %v854_v49, 0.0  ;;  %v870_v57 = vmul.f32 0.1, %v854_v49 }
 0x101   : > { %v1095_v59 = vpack.c.bf16 %v880_v56, %v880_v56  ;;  %v874_v60 = vsel %vm858_vm5, %v850_v45, %v866_v52  ;;  %vm861_vm7 = vcmp.ge.f32.partialorder %v853_v53, 0.0  ;;  %v869_v61 = vmul.f32 0.1, %v853_v53 }
 0x102   : > { %917 = vst.msk [vmem:[%s1405_s28 + $0x8] sm:$0xf] %vm914_vm2, %v1091_v55  ;;  %v1089_v62 = vpack.c.bf16 %v874_v60, %v874_v60  ;;  %v878_v63 = vsel %vm862_vm6, %v854_v49, %v870_v57  ;;  %v857_v0 = vadd.f32 %v1077_v27, %v842_v50  ;;  %v836_v1 = vadd.f32 %v807_v54, %v699_v35 }
 0x103   : > { %921 = vst.msk [vmem:[%s1405_s28 + $0x18] sm:$0xf] %vm914_vm2, %v1095_v59  ;;  %v1093_v2 = vpack.c.bf16 %v878_v63, %v878_v63  ;;  %v877_v3 = vsel %vm861_vm7, %v853_v53, %v869_v61  ;;  %v840_v4 = vadd.f32 %v823_v58, %v703_v40 }
 0x104   : > { %915 = vst.msk [vmem:[%s1405_s28] sm:$0xf] %vm914_vm2, %v1089_v62  ;;  %v1092_v5 = vpack.c.bf16 %v877_v3, %v877_v3  ;;  %vm865_vm8 = vcmp.ge.f32.partialorder %v857_v0, 0.0  ;;  %v873_v6 = vmul.f32 0.1, %v857_v0  ;;  %v851_v7 = vadd.f32 %v1077_v27, %v836_v1 }
 0x105   : > { %919 = vst.msk [vmem:[%s1405_s28 + $0x10] sm:$0xf] %vm914_vm2, %v1093_v2  ;;  %v855_v8 = vadd.f32 %v1077_v27, %v840_v4 }
 0x106   : > { %918 = vst.msk [vmem:[%s1405_s28 + $0xc] sm:$0xf] %vm914_vm2, %v1092_v5  ;;  %v881_v9 = vsel %vm865_vm8, %v857_v0, %v873_v6  ;;  %vm859_vm9 = vcmp.ge.f32.partialorder %v851_v7, 0.0  ;;  %v867_v10 = vmul.f32 0.1, %v851_v7 }
 0x107   : > { %v1096_v11 = vpack.c.bf16 %v881_v9, %v881_v9  ;;  %vm863_vm10 = vcmp.ge.f32.partialorder %v855_v8, 0.0  ;;  %v871_v12 = vmul.f32 0.1, %v855_v8 }
 0x108   : > { %v875_v13 = vsel %vm859_vm9, %v851_v7, %v867_v10 }
 0x109   : > { %922 = vst.msk [vmem:[%s1405_s28 + $0x1c] sm:$0xf] %vm914_vm2, %v1096_v11  ;;  %v1090_v14 = vpack.c.bf16 %v875_v13, %v875_v13  ;;  %v879_v15 = vsel %vm863_vm10, %v855_v8, %v871_v12 }
 0x10a   : > { %v1094_v16 = vpack.c.bf16 %v879_v15, %v879_v15 }
 0x10b   : > { %916 = vst.msk [vmem:[%s1405_s28 + $0x4] sm:$0xf] %vm914_vm2, %v1090_v14 }
 0x10c   : > { %920 = vst.msk [vmem:[%s1405_s28 + $0x14] sm:$0xf] %vm914_vm2, %v1094_v16 }
 0x10d PF: > { %s13_s12 = sadd.s32 1, %s1264_s12  }
 0x10e   : > { %p10_p4 = scmp.ge.s32.totalorder %s13_s12, 4  }
 0x110   :  { %12 = sbr.rel (!%p10_p4) target bundleno = 1 (0x1), region = 67 }

// kernel: _encoder_forward.4
= control target key start
LH: loop header
LB: loop body
LE: loop exit
PB: predicated region body
PF: predicated region fallthrough
CT: control target
= control target key end

     0   :  { %s1819_s12 = smov 0   ;;  %s2078_s0 = inlined_call_operand.vmem [shape: bf16[2,2,160,20], index: 0, kind: input, shape index: {}]   ;;  %s2079_s1 = inlined_call_operand.vmem [shape: bf16[5,20,8], index: 1, kind: input, shape index: {}]   ;;  %s2080_s2 = inlined_call_operand.vmem [shape: f32[1,8], index: 2, kind: input, shape index: {}]   ;;  %s2081_s3 = inlined_call_operand.vmem [shape: bf16[2,128,8], index: 3, kind: output, shape index: {}]  }
   0x1 LB: > { %s1394_s13 = sadd.s32 4294967295, %s1797_s12   ;;  %p1398_p0 = scmp.ge.s32.totalorder %s1797_s12, 1  ;;  %s1797_s12 = sphi %s1819_s12, %s13_s12  }
   0x2   : > { %p137_p1 = scmp.lt.s32.totalorder %s1797_s12, 3 }
   0x4   : > { %p138_p2 = pnand %p1398_p0, %p137_p1 }
   0x5   : > { %p161_p3 = scmp.lt.s32.totalorder (!%p138_p2), %s1394_s13, 1 }
   0x6   : > { %141 = sbr.rel (%p138_p2) target bundleno = 304 (0x130), region = 32 }
   0xb   : > { %v1741_v0 = vld [vmem:[%s2079_s1 + $0x14] ss:$0 sps:$4 sm:$0x33]   ;;  %vm286_vm0 = vcmask 1041408   ;;  %v1742_v1 = vld [vmem:[%s2079_s1 + $0xc] sm:$0xff]   ;;  %s2083_s13 = smov (!%p161_p3, %s1394_s13), 1 }
   0xc   : > { %1726 = vmatprep.subr.msk.bf16.mxu0 %vm286_vm0, %v1741_v0  ;;  %1727 = vmatprep.subr.msk.bf16.mxu1 %vm286_vm0, %v1741_v0  ;;  %v288_v2 = vsel %vm286_vm0, %v1741_v0, 0  ;;  %v1747_v3 = vld [vmem:[%s2079_s1 + $0x8] ss:$0 sps:$4 sm:$0x33]   ;;  %s1732_s22 = smul.u32 160, %s2083_s13  ;;  %vm261_vm1 = vcmask 162816  }
   0xd   : > { %1623 = vmatpush3.bf16.msra.mxu0 %v288_v2  ;;  %1724 = vmatpush3.bf16.msra.mxu1 %v288_v2  ;;  %v1748_v4 = vld [vmem:[%s2079_s1 + $0x20] ss:$0 sps:$4 sm:$0x33]   ;;  %v1754_v10 = vld [vmem:[%s2079_s1 + $0x18] sm:$0xff]   ;;  %v461_v12 = vsel %vm286_vm0, %v1747_v3, 0  ;;  %v1769_v27 = vld [vmem:[%s2079_s1 + $0x24] sm:$0xff]  }
   0xe   : > { %1624 = vmatprep.subr.bf16.mxu0 %v1742_v1  ;;  %1723 = vmatprep.subr.bf16.mxu1 %v1742_v1  ;;  %s1848_s25 = scalar_lea.vmem %s2078_s0, %s1732_s22  ;;  %v1753_v7 = vld [vmem:[%s2079_s1] sm:$0xff]   ;;  %v654_v9 = vsel %vm286_vm0, %v1748_v4, 0  ;;  %v1760_v14 = vld [vmem:[%s2079_s1 + $0x38] ss:$0 sps:$4 sm:$0x33]   ;;  %v1770_v28 = vld [vmem:[%s2079_s1 + $0x30] sm:$0xff]  }
   0xf   : > { %v1743_v5 = vld [vmem:[%s1848_s25 + $0x50] sm:$0xff]   ;;  %v1745_v8 = vld [vmem:[%s1848_s25 + $0x58] sm:$0xff]   ;;  %v1749_v13 = vld [vmem:[%s1848_s25 + $0x60] sm:$0xff]   ;;  %v1072_v23 = vsel %vm286_vm0, %v1760_v14, 0  ;;  %vm1322_vm2 = vcmask 60416   ;;  %s1555_s15 = sshll.u32 %s2083_s13, 6 }
  0x10   : > { %v1744_v6 = vld [vmem:[%s1848_s25 + $0x70] sm:$0xff]   ;;  %1626 = vmatprep.mubr.msk.bf16.mxu0 %vm261_vm1, %v1743_v5  ;;  %v1746_v11 = vld [vmem:[%s1848_s25 + $0x78] sm:$0xff]   ;;  %v1750_v15 = vld [vmem:[%s1848_s25 + $0x80] sm:$0xff]   ;;  %s2009_s18 = scalar_lea.vmem %s2081_s3, %s1555_s15 }
  0x11   : > { %1625 = vmatpush3.bf16.msra.mxu0 %v1742_v1  ;;  %1725 = vmatpush3.bf16.msra.mxu1 %v1742_v1  ;;  %v1759_v16 = vld [vmem:[%s2079_s1 + $0x2c] ss:$0 sps:$4 sm:$0x33]   ;;  %v1755_v20 = vld [vmem:[%s1848_s25] sm:$0xff]   ;;  %v1758_v21 = vld [vmem:[%s1848_s25 + $0x10] sm:$0xff]  }
  0x12   : > { %1728 = vmatprep.subr.msk.bf16.mxu1 %vm286_vm0, %v1747_v3  ;;  %1729 = vmatprep.subr.msk.bf16.mxu0 %vm286_vm0, %v1748_v4  ;;  %v1751_v17 = vld [vmem:[%s1848_s25 + $0x68] sm:$0xff]   ;;  %v1761_v24 = vld [vmem:[%s1848_s25 + $0x10] sm:$0xff]   ;;  %v863_v25 = vsel %vm286_vm0, %v1759_v16, 0  ;;  %v1762_v26 = vld [vmem:[%s1848_s25 + $0x18] sm:$0xff]  }
  0x13   : > { %1634 = vmatprep.mubr.msk.bf16.mxu1 %vm261_vm1, %v1744_v6  ;;  %v1752_v18 = vld [vmem:[%s1848_s25 + $0x88] sm:$0xff]   ;;  %v1763_v29 = vld [vmem:[%s1848_s25 + $0x18] sm:$0xff]   ;;  %v1764_v30 = vld [vmem:[%s1848_s25 + $0x20] sm:$0xff]  }
  0x14   : > { %1627 = vmatmul.mubr.msk.bf16.vlgmr.msra.gmra.mxu0 %vm261_vm1, %v1745_v8  ;;  %1635 = vmatmul.mubr.msk.bf16.vlgmr.msra.gmra.mxu1 %vm261_vm1, %v1746_v11  ;;  %v1756_v19 = vld [vmem:[%s1848_s25 + $0x8] sm:$0xff]   ;;  %v1765_v32 = vld [vmem:[%s1848_s25 + $0x20] sm:$0xff]   ;;  %v1768_v34 = vld [vmem:[%s1848_s25 + $0x30] sm:$0xff]  }
  0x15   : > { %1663 = vmatpush3.bf16.msra.mxu0 %v654_v9  ;;  %1643 = vmatpush3.bf16.msra.mxu1 %v461_v12  ;;  %v1757_v22 = vld [vmem:[%s1848_s25 + $0x8] sm:$0xff]   ;;  %v1772_v35 = vld [vmem:[%s1848_s25 + $0x38] sm:$0xff]   ;;  %v1771_v36 = vld [vmem:[%s1848_s25 + $0x30] sm:$0xff]  }
  0x16   : > { %1630 = vmatprep.mubr.msk.bf16.mxu0 %vm261_vm1, %v1749_v13  ;;  %1638 = vmatprep.mubr.msk.bf16.mxu1 %vm261_vm1, %v1750_v15  ;;  %v1766_v31 = vld [vmem:[%s1848_s25 + $0x28] sm:$0xff]   ;;  %v1773_v37 = vld [vmem:[%s1848_s25 + $0x38] sm:$0xff]   ;;  %v1774_v38 = vld [vmem:[%s1848_s25 + $0x40] sm:$0xff]  }
  0x17   : > { %1644 = vmatprep.subr.bf16.mxu1 %v1753_v7  ;;  %1664 = vmatprep.subr.bf16.mxu0 %v1754_v10  ;;  %v1767_v33 = vld [vmem:[%s1848_s25 + $0x28] sm:$0xff]   ;;  %v1776_v39 = vld [vmem:[%s1848_s25 + $0x10] sm:$0xff]   ;;  %v1775_v40 = vld [vmem:[%s1848_s25 + $0x58] sm:$0xff]  }
  0x18   : > { %v1778_v41 = vld [vmem:[%s1848_s25 + $0x18] sm:$0xff]   ;;  %v1777_v42 = vld [vmem:[%s1848_s25 + $0x60] sm:$0xff]   ;;  %v1779_v44 = vld [vmem:[%s1848_s25 + $0x68] sm:$0xff]  }
  0x19   : > { %1665 = vmatpush3.bf16.msra.mxu0 %v1754_v10  ;;  %1645 = vmatpush3.bf16.msra.mxu1 %v1753_v7  ;;  %v1780_v43 = vld [vmem:[%s1848_s25 + $0x20] sm:$0xff]   ;;  %v1782_v45 = vld [vmem:[%s1848_s25 + $0x28] sm:$0xff]   ;;  %v1781_v46 = vld [vmem:[%s1848_s25 + $0x70] sm:$0xff]  }
  0x1a   : > { %1731 = vmatprep.subr.msk.bf16.mxu0 %vm286_vm0, %v1760_v14  ;;  %1730 = vmatprep.subr.msk.bf16.mxu1 %vm286_vm0, %v1759_v16  ;;  %v1784_v47 = vld [vmem:[%s1848_s25 + $0x30] sm:$0xff]   ;;  %v1783_v48 = vld [vmem:[%s1848_s25 + $0x78] sm:$0xff]   ;;  %v1785_v50 = vld [vmem:[%s1848_s25 + $0x80] sm:$0xff]  }
  0x1b   : > { %v1786_v49 = vld [vmem:[%s1848_s25 + $0x38] sm:$0xff]   ;;  %v1788_v51 = vld [vmem:[%s1848_s25 + $0x40] sm:$0xff]   ;;  %v1787_v52 = vld [vmem:[%s1848_s25 + $0x88] sm:$0xff]  }
  0x1c   : > { %1631 = vmatmul.mubr.msk.bf16.gmra.mxu0 %vm261_vm1, %v1751_v17  ;;  %1639 = vmatmul.mubr.msk.bf16.gmra.mxu1 %vm261_vm1, %v1752_v18  ;;  %v1790_v53 = vld [vmem:[%s1848_s25 + $0x48] sm:$0xff]   ;;  %v1789_v54 = vld [vmem:[%s1848_s25 + $0x90] sm:$0xff]  }
  0x1d   : > { %1666 = vmatprep.mubr.msk.bf16.mxu0 %vm261_vm1, %v1756_v19  ;;  %1646 = vmatprep.mubr.msk.bf16.mxu1 %vm261_vm1, %v1755_v20 }
  0x24   : > { %1667 = vmatmul.mubr.msk.bf16.vlgmr.msra.gmra.mxu0 %vm261_vm1, %v1758_v21  ;;  %1647 = vmatmul.mubr.msk.bf16.vlgmr.msra.gmra.mxu1 %vm261_vm1, %v1757_v22 }
  0x25   : > { %1703 = vmatpush3.bf16.msra.mxu0 %v1072_v23  ;;  %1683 = vmatpush3.bf16.msra.mxu1 %v863_v25 }
  0x26   : > { %1650 = vmatprep.mubr.msk.bf16.mxu1 %vm261_vm1, %v1761_v24  ;;  %1670 = vmatprep.mubr.msk.bf16.mxu0 %vm261_vm1, %v1762_v26 }
  0x27   : > { %1684 = vmatprep.subr.bf16.mxu1 %v1769_v27  ;;  %1704 = vmatprep.subr.bf16.mxu0 %v1770_v28 }
  0x29   : > { %1705 = vmatpush3.bf16.msra.mxu0 %v1770_v28  ;;  %1685 = vmatpush3.bf16.msra.mxu1 %v1769_v27 }
  0x2c   : > { %1671 = vmatmul.mubr.msk.bf16.gmra.mxu0 %vm261_vm1, %v1764_v30  ;;  %1651 = vmatmul.mubr.msk.bf16.gmra.mxu1 %vm261_vm1, %v1763_v29 }
  0x2d   : > { %1674 = vmatprep.mubr.msk.bf16.mxu0 %vm261_vm1, %v1766_v31  ;;  %1654 = vmatprep.mubr.msk.bf16.mxu1 %vm261_vm1, %v1765_v32 }
  0x34   : > { %1675 = vmatmul.mubr.msk.bf16.gmra.mxu0 %vm261_vm1, %v1768_v34  ;;  %1655 = vmatmul.mubr.msk.bf16.gmra.mxu1 %vm261_vm1, %v1767_v33 }
  0x35   : > { %1678 = vmatprep.mubr.msk.bf16.mxu0 %vm261_vm1, %v1772_v35  ;;  %1658 = vmatprep.mubr.msk.bf16.mxu1 %vm261_vm1, %v1771_v36 }
  0x3c   : > { %1679 = vmatmul.mubr.msk.bf16.gmra.mxu0 %vm261_vm1, %v1774_v38  ;;  %1659 = vmatmul.mubr.msk.bf16.gmra.mxu1 %vm261_vm1, %v1773_v37 }
  0x3d   : > { %1706 = vmatprep.mubr.msk.bf16.mxu0 %vm261_vm1, %v1776_v39  ;;  %1686 = vmatprep.mubr.msk.bf16.mxu1 %vm261_vm1, %v1775_v40 }
  0x44   : > { %1707 = vmatmul.mubr.msk.bf16.vlgmr.msra.gmra.mxu0 %vm261_vm1, %v1778_v41  ;;  %1687 = vmatmul.mubr.msk.bf16.vlgmr.msra.gmra.mxu1 %vm261_vm1, %v1777_v42 }
  0x45   : > { %1710 = vmatprep.mubr.msk.bf16.mxu0 %vm261_vm1, %v1780_v43  ;;  %1690 = vmatprep.mubr.msk.bf16.mxu1 %vm261_vm1, %v1779_v44 }
  0x4c   : > { %1711 = vmatmul.mubr.msk.bf16.gmra.mxu0 %vm261_vm1, %v1782_v45  ;;  %1691 = vmatmul.mubr.msk.bf16.gmra.mxu1 %vm261_vm1, %v1781_v46 }
  0x4d   : > { %1714 = vmatprep.mubr.msk.bf16.mxu0 %vm261_vm1, %v1784_v47  ;;  %1694 = vmatprep.mubr.msk.bf16.mxu1 %vm261_vm1, %v1783_v48 }
  0x54   : > { %1715 = vmatmul.mubr.msk.bf16.gmra.mxu0 %vm261_vm1, %v1786_v49  ;;  %1695 = vmatmul.mubr.msk.bf16.gmra.mxu1 %vm261_vm1, %v1785_v50 }
  0x55   : > { %1718 = vmatprep.mubr.msk.bf16.mxu0 %vm261_vm1, %v1788_v51  ;;  %1698 = vmatprep.mubr.msk.bf16.mxu1 %vm261_vm1, %v1787_v52  ;;  %v1999_v52 = vld [vmem:[%s2080_s2] ss:$0 sm:$0xff] }
  0x5c   : > { %1719 = vmatmul.mubr.msk.bf16.gmra.mxu0 %vm261_vm1, %v1790_v53  ;;  %1699 = vmatmul.mubr.msk.bf16.gmra.mxu1 %vm261_vm1, %v1789_v54 }
  0xd4   : > { %v1628_v55 = vpop.f32.mrf.mxu0  ;;  %v1956_v56 = vpop.f32.mrf.mxu1 }
  0xd6   : > { %v324_v57 = vpop.f32.mrf.mxu0  ;;  %v1958_v58 = vpop.f32.mrf.mxu1 }
  0xd8   : > { %v1629_v59 = vpop.f32.mrf.mxu0  ;;  %v1960_v60 = vpop.f32.mrf.mxu1 }
  0xda   : > { %v327_v61 = vpop.f32.mrf.mxu0  ;;  %v1962_v62 = vpop.f32.mrf.mxu1 }
  0xdc   : > { %v1632_v63 = vpop.f32.mrf.mxu0  ;;  %v1964_v0 = vpop.f32.mrf.mxu1 }
  0xde   : > { %v340_v1 = vpop.f32.mrf.mxu0  ;;  %v1966_v2 = vpop.f32.mrf.mxu1 }
  0xe0   : > { %v1633_v3 = vpop.f32.mrf.mxu0  ;;  %v1968_v4 = vpop.f32.mrf.mxu1 }
  0xe2   : > { %v343_v5 = vpop.f32.mrf.mxu0  ;;  %v1970_v6 = vpop.f32.mrf.mxu1 }
  0xe4   : > { %v1668_v7 = vpop.f32.mrf.mxu0  ;;  %v1648_v8 = vpop.f32.mrf.mxu1 }
  0xe5   : > { %v506_v35 = vadd.f32 %v1648_v8, %v1628_v55 }
  0xe6   : > { %v690_v9 = vpop.f32.mrf.mxu0  ;;  %v497_v10 = vpop.f32.mrf.mxu1 }
  0xe7   : > { %v498_v38 = vadd.f32 %v497_v10, %v324_v57  ;;  %v755_v41 = vadd.f32 %v1668_v7, %v506_v35 }
  0xe8   : > { %v1669_v11 = vpop.f32.mrf.mxu0  ;;  %v1649_v12 = vpop.f32.mrf.mxu1 }
  0xe9   : > { %v509_v42 = vadd.f32 %v1649_v12, %v1629_v59  ;;  %v753_v45 = vadd.f32 %v690_v9, %v498_v38 }
  0xea   : > { %v693_v13 = vpop.f32.mrf.mxu0  ;;  %v500_v14 = vpop.f32.mrf.mxu1 }
  0xeb   : > { %v501_v48 = vadd.f32 %v500_v14, %v327_v61  ;;  %v756_v54 = vadd.f32 %v1669_v11, %v509_v42 }
  0xec   : > { %v1672_v15 = vpop.f32.mrf.mxu0  ;;  %v1652_v16 = vpop.f32.mrf.mxu1 }
  0xed   : > { %v522_v49 = vadd.f32 %v1652_v16, %v1632_v63  ;;  %v754_v10 = vadd.f32 %v693_v13, %v501_v48 }
  0xee   : > { %v706_v17 = vpop.f32.mrf.mxu0  ;;  %v513_v18 = vpop.f32.mrf.mxu1 }
  0xef   : > { %v514_v50 = vadd.f32 %v513_v18, %v340_v1  ;;  %v759_v12 = vadd.f32 %v1672_v15, %v522_v49 }
  0xf0   : > { %v1673_v19 = vpop.f32.mrf.mxu0  ;;  %v1653_v20 = vpop.f32.mrf.mxu1 }
  0xf1   : > { %v525_v51 = vadd.f32 %v1653_v20, %v1633_v3  ;;  %v757_v14 = vadd.f32 %v706_v17, %v514_v50 }
  0xf2   : > { %v709_v21 = vpop.f32.mrf.mxu0  ;;  %v516_v22 = vpop.f32.mrf.mxu1 }
  0xf3   : > { %v517_v7 = vadd.f32 %v516_v22, %v343_v5  ;;  %v760_v16 = vadd.f32 %v1673_v19, %v525_v51 }
  0xf4   : > { %v1676_v23 = vpop.f32.mrf.mxu0  ;;  %v1656_v24 = vpop.f32.mrf.mxu1 }
  0xf5   : > { %v538_v8 = vadd.f32 %v1656_v24, %v1956_v56  ;;  %v758_v56 = vadd.f32 %v709_v21, %v517_v7 }
  0xf6   : > { %v1972_v25 = vpop.f32.mrf.mxu0  ;;  %v529_v26 = vpop.f32.mrf.mxu1 }
  0xf7   : > { %v763_v24 = vadd.f32 %v1676_v23, %v538_v8  ;;  %v530_v35 = vadd.f32 %v529_v26, %v1958_v58 }
  0xf8   : > { %v1974_v27 = vpop.f32.mrf.mxu0  ;;  %v1657_v28 = vpop.f32.mrf.mxu1 }
  0xf9   : > { %v541_v42 = vadd.f32 %v1657_v28, %v1960_v60  ;;  %v761_v28 = vadd.f32 %v1972_v25, %v530_v35 }
  0xfa   : > { %v1976_v29 = vpop.f32.mrf.mxu0  ;;  %v1978_v30 = vpop.f32.mrf.mxu1 }
  0xfb   : > { %v764_v7 = vadd.f32 %v1974_v27, %v541_v42 }
  0xfc   : > { %v1980_v31 = vpop.f32.mrf.mxu0  ;;  %v1982_v32 = vpop.f32.mrf.mxu1 }
  0xfe   : > { %v1984_v33 = vpop.f32.mrf.mxu0  ;;  %v1986_v34 = vpop.f32.mrf.mxu1 }
 0x100   : > { %v1988_v36 = vpop.f32.mrf.mxu0  ;;  %v1990_v37 = vpop.f32.mrf.mxu1 }
 0x102   : > { %v1992_v39 = vpop.f32.mrf.mxu0  ;;  %v1994_v40 = vpop.f32.mrf.mxu1 }
 0x104   : > { %v1708_v43 = vpop.f32.mrf.mxu0  ;;  %v1688_v44 = vpop.f32.mrf.mxu1 }
 0x105   : > { %v964_v46 = vadd.f32 %v1688_v44, %v755_v41 }
 0x106   : > { %v1108_v47 = vpop.f32.mrf.mxu0  ;;  %v899_v53 = vpop.f32.mrf.mxu1 }
 0x107   : > { %v1173_v55 = vadd.f32 %v1708_v43, %v964_v46  ;;  %v962_v57 = vadd.f32 %v899_v53, %v753_v45 }
 0x108   : > { %v1709_v59 = vpop.f32.mrf.mxu0  ;;  %v1689_v9 = vpop.f32.mrf.mxu1 }
 0x109   : > { %v1196_v61 = vadd.f32 %v1999_v52, %v1173_v55  ;;  %v1171_v63 = vadd.f32 %v1108_v47, %v962_v57  ;;  %v965_v1 = vadd.f32 %v1689_v9, %v756_v54  ;;  %v533_v47 = vadd.f32 %v1978_v30, %v1962_v62 }
 0x10a   : > { %v1111_v3 = vpop.f32.mrf.mxu0  ;;  %v902_v11 = vpop.f32.mrf.mxu1 }
 0x10b   : > { %vm1212_vm3 = vcmp.ge.f32.partialorder %v1196_v61, 0.0  ;;  %v1228_v18 = vmul.f32 0.1, %v1196_v61  ;;  %v1194_v20 = vadd.f32 %v1999_v52, %v1171_v63  ;;  %v1174_v5 = vadd.f32 %v1709_v59, %v965_v1 }
 0x10c   : > { %v1712_v22 = vpop.f32.mrf.mxu0  ;;  %v963_v38 = vadd.f32 %v902_v11, %v754_v10  ;;  %v1692_v41 = vpop.f32.mrf.mxu1  ;;  %v762_v63 = vadd.f32 %v1976_v29, %v533_v47  ;;  %v554_v11 = vadd.f32 %v1982_v32, %v1964_v0  ;;  %v546_v0 = vadd.f32 %v1986_v34, %v1966_v2 }
 0x10d   : > { %v1244_v13 = vsel %vm1212_vm3, %v1196_v61, %v1228_v18  ;;  %vm1210_vm4 = vcmp.ge.f32.partialorder %v1194_v20, 0.0  ;;  %v1226_v15 = vmul.f32 0.1, %v1194_v20  ;;  %v1197_v17 = vadd.f32 %v1999_v52, %v1174_v5 }
 0x10e   : > { %v1124_v19 = vpop.f32.mrf.mxu0  ;;  %v1558_v21 = vpack.c.bf16 %v1244_v13, %v1244_v13  ;;  %v1172_v23 = vadd.f32 %v1111_v3, %v963_v38  ;;  %v968_v43 = vadd.f32 %v1692_v41, %v759_v12  ;;  %v915_v58 = vpop.f32.mrf.mxu1  ;;  %v557_v32 = vadd.f32 %v1990_v37, %v1968_v4 }
 0x10f   : > { %v1242_v26 = vsel %vm1210_vm4, %v1194_v20, %v1226_v15  ;;  %vm1213_vm5 = vcmp.ge.f32.partialorder %v1197_v17, 0.0  ;;  %v1229_v44 = vmul.f32 0.1, %v1197_v17  ;;  %v966_v45 = vadd.f32 %v915_v58, %v757_v14 }
 0x110   : > { %v1713_v46 = vpop.f32.mrf.mxu0  ;;  %1325 = vst.msk [vmem:[%s2009_s18 + $0x8] sm:$0xf] %vm1322_vm2, %v1558_v21  ;;  %v1556_v48 = vpack.c.bf16 %v1242_v26, %v1242_v26  ;;  %v1195_v49 = vadd.f32 %v1999_v52, %v1172_v23  ;;  %v1177_v50 = vadd.f32 %v1712_v22, %v968_v43  ;;  %v1693_v60 = vpop.f32.mrf.mxu1  ;;  %v549_v37 = vadd.f32 %v1994_v40, %v1970_v6 }
 0x111   : > { %v1245_v51 = vsel %vm1213_vm5, %v1197_v17, %v1229_v44  ;;  %v1175_v53 = vadd.f32 %v1124_v19, %v966_v45  ;;  %v969_v54 = vadd.f32 %v1693_v60, %v760_v16  ;;  %v767_v44 = vadd.f32 %v1980_v31, %v554_v11 }
 0x112   : > { %v1127_v55 = vpop.f32.mrf.mxu0  ;;  %1323 = vst.msk [vmem:[%s2009_s18] sm:$0xf] %vm1322_vm2, %v1556_v48  ;;  %v1559_v57 = vpack.c.bf16 %v1245_v51, %v1245_v51  ;;  %vm1211_vm6 = vcmp.ge.f32.partialorder %v1195_v49, 0.0  ;;  %v1227_v59 = vmul.f32 0.1, %v1195_v49  ;;  %v1200_v62 = vadd.f32 %v1999_v52, %v1177_v50  ;;  %v918_v30 = vpop.f32.mrf.mxu1 }
 0x113   : > { %v1198_v8 = vadd.f32 %v1999_v52, %v1175_v53  ;;  %v1178_v9 = vadd.f32 %v1713_v46, %v969_v54  ;;  %v967_v61 = vadd.f32 %v918_v30, %v758_v56  ;;  %v765_v51 = vadd.f32 %v1984_v33, %v546_v0 }
 0x114   : > { %v1716_v25 = vpop.f32.mrf.mxu0  ;;  %1326 = vst.msk [vmem:[%s2009_s18 + $0xc] sm:$0xf] %vm1322_vm2, %v1559_v57  ;;  %v1243_v1 = vsel %vm1211_vm6, %v1195_v49, %v1227_v59  ;;  %vm1216_vm7 = vcmp.ge.f32.partialorder %v1200_v62, 0.0  ;;  %v1232_v3 = vmul.f32 0.1, %v1200_v62  ;;  %v1696_v10 = vpop.f32.mrf.mxu1  ;;  %v768_v53 = vadd.f32 %v1988_v36, %v557_v32 }
 0x115   : > { %v1557_v12 = vpack.c.bf16 %v1243_v1, %v1243_v1  ;;  %vm1214_vm8 = vcmp.ge.f32.partialorder %v1198_v8, 0.0  ;;  %v1230_v14 = vmul.f32 0.1, %v1198_v8  ;;  %v1201_v16 = vadd.f32 %v1999_v52, %v1178_v9 }
 0x116   : > { %v1140_v27 = vpop.f32.mrf.mxu0  ;;  %v1248_v18 = vsel %vm1216_vm7, %v1200_v62, %v1232_v3  ;;  %v1176_v20 = vadd.f32 %v1127_v55, %v967_v61  ;;  %v972_v29 = vadd.f32 %v1696_v10, %v763_v24  ;;  %v931_v5 = vpop.f32.mrf.mxu1  ;;  %v766_v33 = vadd.f32 %v1992_v39, %v549_v37 }
 0x117   : > { %1324 = vst.msk [vmem:[%s2009_s18 + $0x4] sm:$0xf] %vm1322_vm2, %v1557_v12  ;;  %v1562_v22 = vpack.c.bf16 %v1248_v18, %v1248_v18  ;;  %v1246_v56 = vsel %vm1214_vm8, %v1198_v8, %v1230_v14  ;;  %vm1217_vm9 = vcmp.ge.f32.partialorder %v1201_v16, 0.0  ;;  %v1233_v35 = vmul.f32 0.1, %v1201_v16 }
 0x118   : > { %v1717_v38 = vpop.f32.mrf.mxu0  ;;  %v1560_v41 = vpack.c.bf16 %v1246_v56, %v1246_v56  ;;  %v1199_v13 = vadd.f32 %v1999_v52, %v1176_v20  ;;  %v1181_v15 = vadd.f32 %v1716_v25, %v972_v29  ;;  %v970_v17 = vadd.f32 %v931_v5, %v761_v28  ;;  %v1697_v19 = vpop.f32.mrf.mxu1 }
 0x119   : > { %1329 = vst.msk [vmem:[%s2009_s18 + $0x18] sm:$0xf] %vm1322_vm2, %v1562_v22  ;;  %v1249_v24 = vsel %vm1217_vm9, %v1201_v16, %v1233_v35  ;;  %v973_v42 = vadd.f32 %v1697_v19, %v764_v7 }
 0x11a   : > { %v1143_v21 = vpop.f32.mrf.mxu0  ;;  %1327 = vst.msk [vmem:[%s2009_s18 + $0x10] sm:$0xf] %vm1322_vm2, %v1560_v41  ;;  %v1563_v23 = vpack.c.bf16 %v1249_v24, %v1249_v24  ;;  %vm1215_vm10 = vcmp.ge.f32.partialorder %v1199_v13, 0.0  ;;  %v1231_v43 = vmul.f32 0.1, %v1199_v13  ;;  %v1204_v58 = vadd.f32 %v1999_v52, %v1181_v15  ;;  %v934_v26 = vpop.f32.mrf.mxu1 }
 0x11b   : > { %v1179_v2 = vadd.f32 %v1140_v27, %v970_v17  ;;  %v1182_v34 = vadd.f32 %v1717_v38, %v973_v42  ;;  %v971_v45 = vadd.f32 %v934_v26, %v762_v63 }
 0x11c   : > { %v1720_v4 = vpop.f32.mrf.mxu0  ;;  %1330 = vst.msk [vmem:[%s2009_s18 + $0x1c] sm:$0xf] %vm1322_vm2, %v1563_v23  ;;  %v1247_v46 = vsel %vm1215_vm10, %v1199_v13, %v1231_v43  ;;  %vm1220_vm11 = vcmp.ge.f32.partialorder %v1204_v58, 0.0  ;;  %v1236_v47 = vmul.f32 0.1, %v1204_v58  ;;  %v1700_v48 = vpop.f32.mrf.mxu1 }
 0x11d   : > { %v1561_v49 = vpack.c.bf16 %v1247_v46, %v1247_v46  ;;  %v1202_v50 = vadd.f32 %v1999_v52, %v1179_v2  ;;  %v1205_v60 = vadd.f32 %v1999_v52, %v1182_v34  ;;  %v1180_v31 = vadd.f32 %v1143_v21, %v971_v45 }
 0x11e   : > { %v1156_v28 = vpop.f32.mrf.mxu0  ;;  %v1252_v6 = vsel %vm1220_vm11, %v1204_v58, %v1236_v47  ;;  %v976_v40 = vadd.f32 %v1700_v48, %v767_v44  ;;  %v947_v54 = vpop.f32.mrf.mxu1 }
 0x11f   : > { %1328 = vst.msk [vmem:[%s2009_s18 + $0x14] sm:$0xf] %vm1322_vm2, %v1561_v49  ;;  %v1566_v55 = vpack.c.bf16 %v1252_v6, %v1252_v6  ;;  %vm1218_vm12 = vcmp.ge.f32.partialorder %v1202_v50, 0.0  ;;  %v1234_v57 = vmul.f32 0.1, %v1202_v50  ;;  %vm1221_vm13 = vcmp.ge.f32.partialorder %v1205_v60, 0.0 }
 0x120   : > { %v1237_v59 = vmul.f32 0.1, %v1205_v60  ;;  %v1203_v62 = vadd.f32 %v1999_v52, %v1180_v31  ;;  %v1185_v30 = vadd.f32 %v1720_v4, %v976_v40  ;;  %v974_v7 = vadd.f32 %v947_v54, %v765_v51  ;;  %v1701_v8 = vpop.f32.mrf.mxu1  ;;  %v1721_v61 = vpop.f32.mrf.mxu0 }
 0x121   : > { %1333 = vst.msk [vmem:[%s2009_s18 + $0x28] sm:$0xf] %vm1322_vm2, %v1566_v55  ;;  %v1250_v36 = vsel %vm1218_vm12, %v1202_v50, %v1234_v57  ;;  %v977_v9 = vadd.f32 %v1701_v8, %v768_v53 }
 0x122   : > { %v1564_v25 = vpack.c.bf16 %v1250_v36, %v1250_v36  ;;  %v1253_v63 = vsel %vm1221_vm13, %v1205_v60, %v1237_v59  ;;  %vm1219_vm14 = vcmp.ge.f32.partialorder %v1203_v62, 0.0  ;;  %v1235_v1 = vmul.f32 0.1, %v1203_v62  ;;  %v950_v3 = vpop.f32.mrf.mxu1  ;;  %v1159_v29 = vpop.f32.mrf.mxu0 }
 0x123   : > { %v1567_v10 = vpack.c.bf16 %v1253_v63, %v1253_v63  ;;  %v1208_v12 = vadd.f32 %v1999_v52, %v1185_v30  ;;  %v1183_v14 = vadd.f32 %v1156_v28, %v974_v7  ;;  %v1186_v16 = vadd.f32 %v1721_v61, %v977_v9 }
 0x124   : > { %1331 = vst.msk [vmem:[%s2009_s18 + $0x20] sm:$0xf] %vm1322_vm2, %v1564_v25  ;;  %v1251_v39 = vsel %vm1219_vm14, %v1203_v62, %v1235_v1  ;;  %v975_v27 = vadd.f32 %v950_v3, %v766_v33 }
 0x125   : > { %1334 = vst.msk [vmem:[%s2009_s18 + $0x2c] sm:$0xf] %vm1322_vm2, %v1567_v10  ;;  %v1565_v11 = vpack.c.bf16 %v1251_v39, %v1251_v39  ;;  %vm1224_vm15 = vcmp.ge.f32.partialorder %v1208_v12, 0.0  ;;  %v1240_v18 = vmul.f32 0.1, %v1208_v12  ;;  %v1206_v20 = vadd.f32 %v1999_v52, %v1183_v14 }
 0x126   : > { %v1209_v5 = vadd.f32 %v1999_v52, %v1186_v16  ;;  %v1184_v22 = vadd.f32 %v1159_v29, %v975_v27 }
 0x127   : > { %1332 = vst.msk [vmem:[%s2009_s18 + $0x24] sm:$0xf] %vm1322_vm2, %v1565_v11  ;;  %v1256_v56 = vsel %vm1224_vm15, %v1208_v12, %v1240_v18  ;;  %vm1222_vm0 = vcmp.ge.f32.partialorder %v1206_v20, 0.0  ;;  %v1238_v35 = vmul.f32 0.1, %v1206_v20 }
 0x128   : > { %v1570_v38 = vpack.c.bf16 %v1256_v56, %v1256_v56  ;;  %vm1225_vm1 = vcmp.ge.f32.partialorder %v1209_v5, 0.0  ;;  %v1241_v41 = vmul.f32 0.1, %v1209_v5  ;;  %v1207_v13 = vadd.f32 %v1999_v52, %v1184_v22 }
 0x129   : > { %v1254_v15 = vsel %vm1222_vm0, %v1206_v20, %v1238_v35 }
 0x12a   : > { %1337 = vst.msk [vmem:[%s2009_s18 + $0x38] sm:$0xf] %vm1322_vm2, %v1570_v38  ;;  %v1568_v17 = vpack.c.bf16 %v1254_v15, %v1254_v15  ;;  %v1257_v19 = vsel %vm1225_vm1, %v1209_v5, %v1241_v41  ;;  %vm1223_vm3 = vcmp.ge.f32.partialorder %v1207_v13, 0.0  ;;  %v1239_v0 = vmul.f32 0.1, %v1207_v13 }
 0x12b   : > { %v1571_v32 = vpack.c.bf16 %v1257_v19, %v1257_v19 }
 0x12c   : > { %1335 = vst.msk [vmem:[%s2009_s18 + $0x30] sm:$0xf] %vm1322_vm2, %v1568_v17  ;;  %v1255_v24 = vsel %vm1223_vm3, %v1207_v13, %v1239_v0 }
 0x12d   : > { %1338 = vst.msk [vmem:[%s2009_s18 + $0x3c] sm:$0xf] %vm1322_vm2, %v1571_v32  ;;  %v1569_v42 = vpack.c.bf16 %v1255_v24, %v1255_v24 }
 0x12f   : > { %1336 = vst.msk [vmem:[%s2009_s18 + $0x34] sm:$0xf] %vm1322_vm2, %v1569_v42 }
 0x130 PF: > { %s13_s12 = sadd.s32 1, %s1797_s12  }
 0x131   : > { %p10_p4 = scmp.ge.s32.totalorder %s13_s12, 4  }
 0x133   :  { %12 = sbr.rel (!%p10_p4) target bundleno = 1 (0x1), region = 67 }

// kernel: _encoder_forward.6
= control target key start
LH: loop header
LB: loop body
LE: loop exit
PB: predicated region body
PF: predicated region fallthrough
CT: control target
= control target key end

     0   :  { %s1125_s12 = smov 0   ;;  %s1250_s0 = inlined_call_operand.vmem [shape: bf16[2,2,64,80], index: 0, kind: input, shape index: {}]   ;;  %s1251_s1 = inlined_call_operand.vmem [shape: bf16[5,80,32], index: 1, kind: input, shape index: {}]   ;;  %s1252_s2 = inlined_call_operand.vmem [shape: f32[1,32], index: 2, kind: input, shape index: {}]   ;;  %s1253_s3 = inlined_call_operand.vmem [shape: bf16[2,32,32], index: 3, kind: output, shape index: {}]  }
   0x1 LB: > { %s834_s13 = sadd.s32 4294967295, %s1103_s12   ;;  %p838_p0 = scmp.ge.s32.totalorder %s1103_s12, 1  ;;  %s1103_s12 = sphi %s1125_s12, %s13_s12  }
   0x2   : > { %p137_p1 = scmp.lt.s32.totalorder %s1103_s12, 3 }
   0x4   : > { %p138_p2 = pnand %p838_p0, %p137_p1 }
   0x5   : > { %p161_p3 = scmp.lt.s32.totalorder (!%p138_p2), %s834_s13, 1 }
   0x6   : > { %141 = sbr.rel (%p138_p2) target bundleno = 282 (0x11a), region = 32 }
   0xb   : > { %v1062_v0 = vld [vmem:[%s1251_s1 + $0x48] sm:$0xff]   ;;  %v1063_v1 = vld [vmem:[%s1251_s1 + $0x20] sm:$0xff]   ;;  %s1255_s13 = smov (!%p161_p3, %s834_s13), 1  ;;  %v1065_v3 = vld [vmem:[%s1251_s1 + $0x18] sm:$0xff]   ;;  %vm242_vm0 = vcmask 654336   ;;  %vm774_vm2 = vcmask 257024  }
   0xc   : > { %984 = vmatprep.subr.bf16.mxu0 %v1062_v0  ;;  %v1064_v2 = vld [vmem:[%s1251_s1 + $0x40] sm:$0xff]   ;;  %998 = vmatprep.subr.bf16.mxu1 %v1063_v1  ;;  %v1066_v4 = vld [vmem:[%s1251_s1 + $0x38] sm:$0xff]   ;;  %s943_s24 = sshll.u32 %s1255_s13, 6  ;;  %v1067_v5 = vld [vmem:[%s1251_s1 + $0x10] sm:$0xff]   ;;  %s944_s20 = sshll.u32 %s1255_s13, 4 }
   0xd   : > { %985 = vmatpush3.bf16.msra.mxu0 %v1062_v0  ;;  %999 = vmatpush3.bf16.msra.mxu1 %v1063_v1  ;;  %s1157_s29 = scalar_lea.vmem %s1250_s0, %s943_s24  ;;  %v1068_v6 = vld [vmem:[%s1251_s1 + $0x30] sm:$0xff]   ;;  %v1069_v7 = vld [vmem:[%s1251_s1 + $0x8] sm:$0xff]   ;;  %v1071_v11 = vld [vmem:[%s1251_s1] sm:$0xff]   ;;  %s170_s23 = scalar_lea.vmem %s1253_s3, %s944_s20 }
   0xe   : > { %986 = vmatprep.subr.bf16.mxu0 %v1064_v2  ;;  %1000 = vmatprep.subr.bf16.mxu1 %v1065_v3  ;;  %v1072_v8 = vld [vmem:[%s1157_s29 + $0x20] sm:$0xff]   ;;  %v1070_v10 = vld [vmem:[%s1251_s1 + $0x28] sm:$0xff]   ;;  %v1076_v12 = vld [vmem:[%s1251_s1 + $0x70] sm:$0xff]  }
   0xf   : > { %v1073_v9 = vld [vmem:[%s1157_s29] sm:$0xff]   ;;  %994 = vmatprep.mubr.msk.bf16.mxu0 %vm242_vm0, %v1072_v8  ;;  %v1077_v13 = vld [vmem:[%s1251_s1 + $0x98] sm:$0xff]   ;;  %v1074_v14 = vld [vmem:[%s1157_s29 + $0x28] sm:$0xff]  }
  0x10   : > { %1008 = vmatprep.mubr.msk.bf16.mxu1 %vm242_vm0, %v1073_v9  ;;  %v1075_v15 = vld [vmem:[%s1157_s29 + $0x8] sm:$0xff]   ;;  %v1079_v17 = vld [vmem:[%s1251_s1 + $0x90] sm:$0xff]   ;;  %v1080_v18 = vld [vmem:[%s1251_s1 + $0x60] sm:$0xff]  }
  0x11   : > { %987 = vmatpush3.bf16.msra.mxu0 %v1064_v2  ;;  %1001 = vmatpush3.bf16.msra.mxu1 %v1065_v3  ;;  %v1078_v16 = vld [vmem:[%s1251_s1 + $0x68] sm:$0xff]   ;;  %v1082_v22 = vld [vmem:[%s1251_s1 + $0x58] sm:$0xff]   ;;  %v1083_v23 = vld [vmem:[%s1251_s1 + $0x80] sm:$0xff]  }
  0x12   : > { %988 = vmatprep.subr.bf16.mxu0 %v1066_v4  ;;  %1002 = vmatprep.subr.bf16.mxu1 %v1067_v5  ;;  %v1086_v19 = vld [vmem:[%s1157_s29 + $0x8] sm:$0xff]   ;;  %v1084_v24 = vld [vmem:[%s1251_s1 + $0x50] sm:$0xff]   ;;  %v1085_v25 = vld [vmem:[%s1251_s1 + $0x78] sm:$0xff]  }
  0x13   : > { %v1081_v20 = vld [vmem:[%s1251_s1 + $0x88] sm:$0xff]   ;;  %v1088_v26 = vld [vmem:[%s1251_s1 + $0xc0] sm:$0xff]   ;;  %v1087_v27 = vld [vmem:[%s1157_s29 + $0x10] sm:$0xff]  }
  0x14   : > { %v1089_v21 = vld [vmem:[%s1157_s29 + $0x28] sm:$0xff]   ;;  %v1090_v28 = vld [vmem:[%s1157_s29 + $0x30] sm:$0xff]   ;;  %v1091_v29 = vld [vmem:[%s1251_s1 + $0xb8] sm:$0xff]  }
  0x15   : > { %989 = vmatpush3.bf16.msra.mxu0 %v1066_v4  ;;  %1003 = vmatpush3.bf16.msra.mxu1 %v1067_v5  ;;  %v1095_v30 = vld [vmem:[%s1157_s29 + $0x10] sm:$0xff]   ;;  %v1093_v32 = vld [vmem:[%s1251_s1 + $0xa8] sm:$0xff]   ;;  %v1094_v33 = vld [vmem:[%s1251_s1 + $0xa0] sm:$0xff]  }
  0x16   : > { %990 = vmatprep.subr.bf16.mxu0 %v1068_v6  ;;  %1004 = vmatprep.subr.bf16.mxu1 %v1069_v7  ;;  %v1092_v31 = vld [vmem:[%s1251_s1 + $0xb0] sm:$0xff]   ;;  %v1096_v34 = vld [vmem:[%s1157_s29 + $0x18] sm:$0xff]   ;;  %v936_v59 = vld [vmem:[%s1252_s2] ss:$0 sm:$0xff] }
  0x19   : > { %991 = vmatpush3.bf16.msra.mxu0 %v1068_v6  ;;  %1005 = vmatpush3.bf16.msra.mxu1 %v1069_v7 }
  0x1a   : > { %992 = vmatprep.subr.bf16.mxu0 %v1070_v10  ;;  %1006 = vmatprep.subr.bf16.mxu1 %v1071_v11 }
  0x1d   : > { %993 = vmatpush3.bf16.msra.mxu0 %v1070_v10  ;;  %1007 = vmatpush3.bf16.msra.mxu1 %v1071_v11 }
  0x1e   : > { %1012 = vmatprep.subr.bf16.mxu0 %v1076_v12  ;;  %1026 = vmatprep.subr.bf16.mxu1 %v1077_v13 }
  0x20   : > { %995 = vmatmul.mubr.msk.bf16.vlgmr.msra.gmra.mxu0 %vm242_vm0, %v1074_v14  ;;  %1009 = vmatmul.mubr.msk.bf16.vlgmr.msra.gmra.mxu1 %vm242_vm0, %v1075_v15 }
  0x21   : > { %1013 = vmatpush3.bf16.msra.mxu0 %v1076_v12  ;;  %1027 = vmatpush3.bf16.msra.mxu1 %v1077_v13 }
  0x22   : > { %1014 = vmatprep.subr.bf16.mxu0 %v1078_v16  ;;  %1028 = vmatprep.subr.bf16.mxu1 %v1079_v17 }
  0x23   : > { %1022 = vmatprep.mubr.msk.bf16.mxu0 %vm242_vm0, %v1086_v19  ;;  %1036 = vmatprep.mubr.msk.bf16.mxu1 %vm242_vm0, %v1089_v21 }
  0x25   : > { %1015 = vmatpush3.bf16.msra.mxu0 %v1078_v16  ;;  %1029 = vmatpush3.bf16.msra.mxu1 %v1079_v17 }
  0x26   : > { %1016 = vmatprep.subr.bf16.mxu0 %v1080_v18  ;;  %1030 = vmatprep.subr.bf16.mxu1 %v1081_v20 }
  0x29   : > { %1017 = vmatpush3.bf16.msra.mxu0 %v1080_v18  ;;  %1031 = vmatpush3.bf16.msra.mxu1 %v1081_v20 }
  0x2a   : > { %1018 = vmatprep.subr.bf16.mxu0 %v1082_v22  ;;  %1032 = vmatprep.subr.bf16.mxu1 %v1083_v23 }
  0x2d   : > { %1019 = vmatpush3.bf16.msra.mxu0 %v1082_v22  ;;  %1033 = vmatpush3.bf16.msra.mxu1 %v1083_v23 }
  0x2e   : > { %1020 = vmatprep.subr.bf16.mxu0 %v1084_v24  ;;  %1034 = vmatprep.subr.bf16.mxu1 %v1085_v25 }
  0x31   : > { %1021 = vmatpush3.bf16.msra.mxu0 %v1084_v24  ;;  %1035 = vmatpush3.bf16.msra.mxu1 %v1085_v25 }
  0x32   : > { %1040 = vmatprep.subr.bf16.mxu0 %v1088_v26 }
  0x34   : > { %1023 = vmatmul.mubr.msk.bf16.vlgmr.msra.gmra.mxu0 %vm242_vm0, %v1087_v27  ;;  %1037 = vmatmul.mubr.msk.bf16.vlgmr.msra.gmra.mxu1 %vm242_vm0, %v1090_v28 }
  0x35   : > { %1041 = vmatpush3.bf16.msra.mxu0 %v1088_v26  ;;  %1050 = vmatprep.mubr.msk.bf16.mxu0 %vm242_vm0, %v1095_v30 }
  0x36   : > { %1042 = vmatprep.subr.bf16.mxu0 %v1091_v29 }
  0x39   : > { %1043 = vmatpush3.bf16.msra.mxu0 %v1091_v29 }
  0x3a   : > { %1044 = vmatprep.subr.bf16.mxu0 %v1092_v31 }
  0x3d   : > { %1045 = vmatpush3.bf16.msra.mxu0 %v1092_v31 }
  0x3e   : > { %1046 = vmatprep.subr.bf16.mxu0 %v1093_v32 }
  0x41   : > { %1047 = vmatpush3.bf16.msra.mxu0 %v1093_v32 }
  0x42   : > { %1048 = vmatprep.subr.bf16.mxu0 %v1094_v33 }
  0x45   : > { %1049 = vmatpush3.bf16.msra.mxu0 %v1094_v33 }
  0x48   : > { %1051 = vmatmul.mubr.msk.bf16.vlgmr.msra.gmra.mxu0 %vm242_vm0, %v1096_v34 }
  0xe0   : > { %v996_v35 = vpop.f32.mrf.mxu0  ;;  %v1010_v37 = vpop.f32.mrf.mxu1 }
  0xe1   : > { %v387_v46 = vadd.f32 %v1010_v37, %v996_v35 }
  0xe2   : > { %v283_v36 = vpop.f32.mrf.mxu0  ;;  %v378_v39 = vpop.f32.mrf.mxu1 }
  0xe3   : > { %v379_v48 = vadd.f32 %v378_v39, %v283_v36 }
  0xe4   : > { %v997_v38 = vpop.f32.mrf.mxu0  ;;  %v1011_v41 = vpop.f32.mrf.mxu1 }
  0xe5   : > { %v390_v51 = vadd.f32 %v1011_v41, %v997_v38 }
  0xe6   : > { %v286_v40 = vpop.f32.mrf.mxu0  ;;  %v381_v43 = vpop.f32.mrf.mxu1 }
  0xe7   : > { %v382_v57 = vadd.f32 %v381_v43, %v286_v40 }
  0xf4   : > { %v1024_v42 = vpop.f32.mrf.mxu0  ;;  %v1038_v45 = vpop.f32.mrf.mxu1 }
  0xf5   : > { %v505_v49 = vadd.f32 %v1024_v42, %v387_v46 }
  0xf6   : > { %v488_v44 = vpop.f32.mrf.mxu0  ;;  %v602_v50 = vpop.f32.mrf.mxu1 }
  0xf7   : > { %v503_v52 = vadd.f32 %v488_v44, %v379_v48  ;;  %v619_v54 = vadd.f32 %v1038_v45, %v505_v49 }
  0xf8   : > { %v1025_v47 = vpop.f32.mrf.mxu0  ;;  %v1039_v56 = vpop.f32.mrf.mxu1 }
  0xf9   : > { %v506_v55 = vadd.f32 %v1025_v47, %v390_v51  ;;  %v617_v60 = vadd.f32 %v602_v50, %v503_v52 }
  0xfa   : > { %v491_v53 = vpop.f32.mrf.mxu0  ;;  %v605_v1 = vpop.f32.mrf.mxu1 }
  0xfb   : > { %v504_v62 = vadd.f32 %v491_v53, %v382_v57  ;;  %v620_v0 = vadd.f32 %v1039_v56, %v506_v55 }
  0xfd   : > { %v618_v8 = vadd.f32 %v605_v1, %v504_v62 }
 0x108   : > { %v1052_v58 = vpop.f32.mrf.mxu0 }
 0x109   : > { %v733_v61 = vadd.f32 %v1052_v58, %v619_v54 }
 0x10a   : > { %v716_v63 = vpop.f32.mrf.mxu0 }
 0x10b   : > { %v744_v2 = vadd.f32 %v936_v59, %v733_v61  ;;  %v731_v3 = vadd.f32 %v716_v63, %v617_v60 }
 0x10c   : > { %v1053_v4 = vpop.f32.mrf.mxu0 }
 0x10d   : > { %vm748_vm1 = vcmp.ge.f32.partialorder %v744_v2, 0.0  ;;  %v752_v5 = vmul.f32 0.1, %v744_v2  ;;  %v742_v6 = vadd.f32 %v936_v59, %v731_v3  ;;  %v734_v7 = vadd.f32 %v1053_v4, %v620_v0 }
 0x10e   : > { %v719_v9 = vpop.f32.mrf.mxu0 }
 0x10f   : > { %v756_v10 = vsel %vm748_vm1, %v744_v2, %v752_v5  ;;  %vm746_vm3 = vcmp.ge.f32.partialorder %v742_v6, 0.0  ;;  %v750_v11 = vmul.f32 0.1, %v742_v6  ;;  %v745_v12 = vadd.f32 %v936_v59, %v734_v7 }
 0x110   : > { %v947_v13 = vpack.c.bf16 %v756_v10, %v756_v10  ;;  %v732_v14 = vadd.f32 %v719_v9, %v618_v8 }
 0x111   : > { %v754_v15 = vsel %vm746_vm3, %v742_v6, %v750_v11  ;;  %vm749_vm4 = vcmp.ge.f32.partialorder %v745_v12, 0.0  ;;  %v753_v16 = vmul.f32 0.1, %v745_v12 }
 0x112   : > { %777 = vst.msk [vmem:[%s170_s23 + $0x8] sm:$0xf] %vm774_vm2, %v947_v13  ;;  %v945_v17 = vpack.c.bf16 %v754_v15, %v754_v15  ;;  %v743_v18 = vadd.f32 %v936_v59, %v732_v14 }
 0x113   : > { %v757_v19 = vsel %vm749_vm4, %v745_v12, %v753_v16 }
 0x114   : > { %775 = vst.msk [vmem:[%s170_s23] sm:$0xf] %vm774_vm2, %v945_v17  ;;  %v948_v20 = vpack.c.bf16 %v757_v19, %v757_v19  ;;  %vm747_vm5 = vcmp.ge.f32.partialorder %v743_v18, 0.0  ;;  %v751_v21 = vmul.f32 0.1, %v743_v18 }
 0x116   : > { %778 = vst.msk [vmem:[%s170_s23 + $0xc] sm:$0xf] %vm774_vm2, %v948_v20  ;;  %v755_v22 = vsel %vm747_vm5, %v743_v18, %v751_v21 }
 0x117   : > { %v946_v23 = vpack.c.bf16 %v755_v22, %v755_v22 }
 0x119   : > { %776 = vst.msk [vmem:[%s170_s23 + $0x4] sm:$0xf] %vm774_vm2, %v946_v23 }
 0x11a PF: > { %s13_s12 = sadd.s32 1, %s1103_s12  }
 0x11b   : > { %p10_p4 = scmp.ge.s32.totalorder %s13_s12, 4  }
 0x11d   :  { %12 = sbr.rel (!%p10_p4) target bundleno = 1 (0x1), region = 67 }

// kernel: _encoder_forward.7
= control target key start
LH: loop header
LB: loop body
LE: loop exit
PB: predicated region body
PF: predicated region fallthrough
CT: control target
= control target key end

     0   :  { %s1209_s12 = smov 0   ;;  %s1450_s0 = inlined_call_operand.vmem [shape: bf16[2,2,48,160], index: 0, kind: input, shape index: {}]   ;;  %s1451_s1 = inlined_call_operand.vmem [shape: bf16[5,160,64], index: 1, kind: input, shape index: {}]   ;;  %s1452_s2 = inlined_call_operand.vmem [shape: f32[1,64], index: 2, kind: input, shape index: {}]   ;;  %s1453_s3 = inlined_call_operand.vmem [shape: bf16[2,16,64], index: 3, kind: output, shape index: {}]  }
   0x1 LB: > { %s940_s13 = sadd.s32 4294967295, %s1186_s12   ;;  %p944_p0 = scmp.ge.s32.totalorder %s1186_s12, 1  ;;  %s1186_s12 = sphi %s1209_s12, %s13_s12  }
   0x2   : > { %p137_p1 = scmp.lt.s32.totalorder %s1186_s12, 3 }
   0x4   : > { %p138_p2 = pnand %p944_p0, %p137_p1 }
   0x5   : > { %p161_p3 = scmp.lt.s32.totalorder (!%p138_p2), %s940_s13, 1 }
   0x6   : > { %141 = sbr.rel (%p138_p2) target bundleno = 339 (0x153), region = 32 }
   0xb   : > { %v1115_v0 = vld [vmem:[%s1451_s1 + $0x88] sm:$0xff]   ;;  %v1188_v1 = vmov 0   ;;  %v1116_v2 = vld [vmem:[%s1451_s1 + $0x38] sm:$0xff]   ;;  %v1117_v3 = vld [vmem:[%s1451_s1 + $0x80] sm:$0xff]   ;;  %s1455_s13 = smov (!%p161_p3, %s940_s13), 1  ;;  %vm287_vm0 = vcmask 261120  }
   0xc   : > { %291 = vmatprep.subr.bf16.mxu0 %v1188_v1  ;;  %404 = vmatprep.subr.bf16.mxu1 %v1188_v1  ;;  %v1118_v4 = vld [vmem:[%s1451_s1 + $0x30] sm:$0xff]   ;;  %v1119_v5 = vld [vmem:[%s1451_s1 + $0x78] sm:$0xff]   ;;  %v1120_v6 = vld [vmem:[%s1451_s1 + $0x28] sm:$0xff]   ;;  %s1105_s5 = smul.u32 96, %s1455_s13  ;;  %s1102_s22 = sshll.u32 %s1455_s13, 3  ;;  %vm882_vm2 = vcmask 519168  }
   0xd   : > { %292 = vmatpush1.bf16.msra.mxu0 %v1115_v0  ;;  %405 = vmatpush1.bf16.msra.mxu1 %v1116_v2  ;;  %v1121_v7 = vld [vmem:[%s1451_s1 + $0x70] sm:$0xff]   ;;  %v1122_v8 = vld [vmem:[%s1451_s1 + $0x20] sm:$0xff]   ;;  %v1123_v9 = vld [vmem:[%s1451_s1 + $0x68] sm:$0xff]   ;;  %s170_s25 = scalar_lea.vmem %s1453_s3, %s1102_s22 }
   0xe   : > { %293 = vmatprep.subr.bf16.mxu0 %v1188_v1  ;;  %406 = vmatprep.subr.bf16.mxu1 %v1188_v1  ;;  %v1124_v10 = vld [vmem:[%s1451_s1 + $0x18] sm:$0xff]   ;;  %v1125_v11 = vld [vmem:[%s1451_s1 + $0x60] sm:$0xff]   ;;  %s1266_s14 = scalar_lea.vmem %s1450_s0, %s1105_s5  ;;  %v1126_v12 = vld [vmem:[%s1451_s1 + $0x10] sm:$0xff]  }
   0xf   : > { %v1137_v13 = vld [vmem:[%s1266_s14 + $0x34] ss:$8 sps:$4 sm:$0xff]   ;;  %v1140_v15 = vld [vmem:[%s1266_s14 + $0x4] ss:$8 sps:$4 sm:$0xff]   ;;  %v1135_v23 = vld [vmem:[%s1266_s14 + $0x30] ss:$8 sps:$4 sm:$0xff]  }
  0x10   : > { %v1127_v14 = vld [vmem:[%s1451_s1 + $0x58] sm:$0xff]   ;;  %v1128_v16 = vld [vmem:[%s1451_s1 + $0x8] sm:$0xff]   ;;  %982 = vmatprep.mubr.msk.bf16.mxu0 %vm287_vm0, %v1137_v13  ;;  %995 = vmatprep.mubr.msk.bf16.mxu1 %vm287_vm0, %v1140_v15  ;;  %v1129_v17 = vld [vmem:[%s1451_s1 + $0x50] sm:$0xff]  }
  0x11   : > { %294 = vmatpush1.bf16.msra.mxu0 %v1117_v3  ;;  %407 = vmatpush1.bf16.msra.mxu1 %v1118_v4  ;;  %v1130_v18 = vld [vmem:[%s1451_s1] sm:$0xff]   ;;  %v1131_v19 = vld [vmem:[%s1451_s1 + $0x98] sm:$0xff]   ;;  %v1132_v20 = vld [vmem:[%s1451_s1 + $0x48] sm:$0xff]  }
  0x12   : > { %295 = vmatprep.subr.bf16.mxu0 %v1188_v1  ;;  %408 = vmatprep.subr.bf16.mxu1 %v1188_v1  ;;  %v1133_v21 = vld [vmem:[%s1451_s1 + $0x90] sm:$0xff]   ;;  %v1134_v22 = vld [vmem:[%s1451_s1 + $0x40] sm:$0xff]   ;;  %v1141_v25 = vld [vmem:[%s1451_s1 + $0xd8] sm:$0xff]  }
  0x13   : > { %v1138_v24 = vld [vmem:[%s1266_s14] ss:$8 sps:$4 sm:$0xff]   ;;  %v1143_v27 = vld [vmem:[%s1451_s1 + $0xd0] sm:$0xff]   ;;  %v1164_v30 = vld [vmem:[%s1266_s14 + $0x44] ss:$8 sps:$4 sm:$0xff]  }
  0x14   : > { %v1142_v26 = vld [vmem:[%s1451_s1 + $0x128] sm:$0xff]   ;;  %v1160_v28 = vld [vmem:[%s1266_s14 + $0x14] ss:$8 sps:$4 sm:$0xff]   ;;  %v1144_v29 = vld [vmem:[%s1451_s1 + $0x120] sm:$0xff]  }
  0x15   : > { %296 = vmatpush1.bf16.msra.mxu0 %v1119_v5  ;;  %409 = vmatpush1.bf16.msra.mxu1 %v1120_v6  ;;  %v1145_v31 = vld [vmem:[%s1451_s1 + $0xc8] sm:$0xff]   ;;  %v1146_v32 = vld [vmem:[%s1451_s1 + $0x118] sm:$0xff]   ;;  %v1147_v33 = vld [vmem:[%s1451_s1 + $0xc0] sm:$0xff]  }
  0x16   : > { %297 = vmatprep.subr.bf16.mxu0 %v1188_v1  ;;  %410 = vmatprep.subr.bf16.mxu1 %v1188_v1  ;;  %v1148_v34 = vld [vmem:[%s1451_s1 + $0x110] sm:$0xff]   ;;  %v1149_v35 = vld [vmem:[%s1451_s1 + $0xb8] sm:$0xff]   ;;  %v1150_v36 = vld [vmem:[%s1451_s1 + $0x108] sm:$0xff]  }
  0x17   : > { %v1151_v37 = vld [vmem:[%s1451_s1 + $0xb0] sm:$0xff]   ;;  %v1152_v38 = vld [vmem:[%s1451_s1 + $0x100] sm:$0xff]   ;;  %v1153_v39 = vld [vmem:[%s1451_s1 + $0xa8] sm:$0xff]  }
  0x18   : > { %v1154_v40 = vld [vmem:[%s1451_s1 + $0xf8] sm:$0xff]   ;;  %v1155_v41 = vld [vmem:[%s1451_s1 + $0xa0] sm:$0xff]   ;;  %v1156_v42 = vld [vmem:[%s1451_s1 + $0xf0] sm:$0xff]  }
  0x19   : > { %298 = vmatpush1.bf16.msra.mxu0 %v1121_v7  ;;  %411 = vmatpush1.bf16.msra.mxu1 %v1122_v8  ;;  %v1157_v43 = vld [vmem:[%s1451_s1 + $0xe8] sm:$0xff]   ;;  %v1158_v44 = vld [vmem:[%s1451_s1 + $0x138] sm:$0xff]   ;;  %v1159_v45 = vld [vmem:[%s1451_s1 + $0xe0] sm:$0xff]  }
  0x1a   : > { %299 = vmatprep.subr.bf16.mxu0 %v1188_v1  ;;  %412 = vmatprep.subr.bf16.mxu1 %v1188_v1  ;;  %v1162_v46 = vld [vmem:[%s1451_s1 + $0x130] sm:$0xff]   ;;  %v1166_v48 = vld [vmem:[%s1451_s1 + $0x178] sm:$0xff]   ;;  %v1167_v49 = vld [vmem:[%s1266_s14 + $0x40] ss:$8 sps:$4 sm:$0xff]  }
  0x1b   : > { %v1163_v47 = vld [vmem:[%s1266_s14 + $0x10] ss:$8 sps:$4 sm:$0xff]   ;;  %v1177_v50 = vld [vmem:[%s1266_s14 + $0x24] ss:$8 sps:$4 sm:$0xff]   ;;  %v1179_v60 = vld [vmem:[%s1266_s14 + $0x20] ss:$8 sps:$4 sm:$0xff]  }
  0x1c   : > { %v1168_v51 = vld [vmem:[%s1451_s1 + $0x170] sm:$0xff]   ;;  %v1169_v52 = vld [vmem:[%s1451_s1 + $0x168] sm:$0xff]   ;;  %v1170_v53 = vld [vmem:[%s1451_s1 + $0x160] sm:$0xff]  }
  0x1d   : > { %300 = vmatpush1.bf16.msra.mxu0 %v1123_v9  ;;  %413 = vmatpush1.bf16.msra.mxu1 %v1124_v10  ;;  %v1171_v54 = vld [vmem:[%s1451_s1 + $0x158] sm:$0xff]   ;;  %v1172_v55 = vld [vmem:[%s1451_s1 + $0x150] sm:$0xff]   ;;  %v1173_v56 = vld [vmem:[%s1451_s1 + $0x148] sm:$0xff]  }
  0x1e   : > { %301 = vmatprep.subr.bf16.mxu0 %v1188_v1  ;;  %414 = vmatprep.subr.bf16.mxu1 %v1188_v1  ;;  %v1174_v57 = vld [vmem:[%s1451_s1 + $0x140] sm:$0xff]   ;;  %v1175_v58 = vld [vmem:[%s1451_s1 + $0x188] sm:$0xff]  }
  0x1f   : > { %v1176_v59 = vld [vmem:[%s1451_s1 + $0x180] sm:$0xff]  }
  0x21   : > { %302 = vmatpush1.bf16.msra.mxu0 %v1125_v11  ;;  %415 = vmatpush1.bf16.msra.mxu1 %v1126_v12 }
  0x22   : > { %303 = vmatprep.subr.bf16.mxu0 %v1188_v1  ;;  %416 = vmatprep.subr.bf16.mxu1 %v1188_v1 }
  0x25   : > { %304 = vmatpush1.bf16.msra.mxu0 %v1127_v14  ;;  %417 = vmatpush1.bf16.msra.mxu1 %v1128_v16 }
  0x26   : > { %305 = vmatprep.subr.bf16.mxu0 %v1188_v1  ;;  %418 = vmatprep.subr.bf16.mxu1 %v1188_v1 }
  0x29   : > { %306 = vmatpush1.bf16.msra.mxu0 %v1129_v17  ;;  %419 = vmatpush1.bf16.msra.mxu1 %v1130_v18 }
  0x2a   : > { %319 = vmatprep.subr.bf16.mxu0 %v1188_v1  ;;  %432 = vmatprep.subr.bf16.mxu1 %v1188_v1 }
  0x2d   : > { %320 = vmatpush2.bf16.msra.mxu0 %v1131_v19  ;;  %433 = vmatpush2.bf16.msra.mxu1 %v1132_v20  ;;  %v1097_v19 = vld [vmem:[%s1452_s2] ss:$0 sm:$0xff] }
  0x2e   : > { %321 = vmatprep.subr.bf16.mxu0 %v1188_v1  ;;  %434 = vmatprep.subr.bf16.mxu1 %v1188_v1 }
  0x31   : > { %322 = vmatpush2.bf16.msra.mxu0 %v1133_v21  ;;  %435 = vmatpush2.bf16.msra.mxu1 %v1134_v22 }
  0x32   : > { %540 = vmatprep.subr.bf16.mxu0 %v1188_v1  ;;  %678 = vmatprep.subr.bf16.mxu1 %v1188_v1 }
  0x34   : > { %324 = vmatmul.mubr.bf16.vlgmr.msra.gmra.mxu0 %v1135_v23  ;;  %437 = vmatmul.mubr.bf16.vlgmr.msra.gmra.mxu1 %v1138_v24 }
  0x35   : > { %541 = vmatpush1.bf16.msra.mxu0 %v1141_v25  ;;  %679 = vmatpush1.bf16.msra.mxu1 %v1142_v26 }
  0x36   : > { %542 = vmatprep.subr.bf16.mxu0 %v1188_v1  ;;  %680 = vmatprep.subr.bf16.mxu1 %v1188_v1 }
  0x37   : > { %1028 = vmatprep.mubr.msk.bf16.mxu0 %vm287_vm0, %v1160_v28  ;;  %1063 = vmatprep.mubr.msk.bf16.mxu1 %vm287_vm0, %v1164_v30 }
  0x39   : > { %543 = vmatpush1.bf16.msra.mxu0 %v1143_v27  ;;  %681 = vmatpush1.bf16.msra.mxu1 %v1144_v29 }
  0x3a   : > { %544 = vmatprep.subr.bf16.mxu0 %v1188_v1  ;;  %682 = vmatprep.subr.bf16.mxu1 %v1188_v1 }
  0x3d   : > { %545 = vmatpush1.bf16.msra.mxu0 %v1145_v31  ;;  %683 = vmatpush1.bf16.msra.mxu1 %v1146_v32 }
  0x3e   : > { %546 = vmatprep.subr.bf16.mxu0 %v1188_v1  ;;  %684 = vmatprep.subr.bf16.mxu1 %v1188_v1 }
  0x41   : > { %547 = vmatpush1.bf16.msra.mxu0 %v1147_v33  ;;  %685 = vmatpush1.bf16.msra.mxu1 %v1148_v34 }
  0x42   : > { %548 = vmatprep.subr.bf16.mxu0 %v1188_v1  ;;  %686 = vmatprep.subr.bf16.mxu1 %v1188_v1 }
  0x45   : > { %549 = vmatpush1.bf16.msra.mxu0 %v1149_v35  ;;  %687 = vmatpush1.bf16.msra.mxu1 %v1150_v36 }
  0x46   : > { %550 = vmatprep.subr.bf16.mxu0 %v1188_v1  ;;  %688 = vmatprep.subr.bf16.mxu1 %v1188_v1 }
  0x49   : > { %551 = vmatpush1.bf16.msra.mxu0 %v1151_v37  ;;  %689 = vmatpush1.bf16.msra.mxu1 %v1152_v38 }
  0x4a   : > { %552 = vmatprep.subr.bf16.mxu0 %v1188_v1  ;;  %690 = vmatprep.subr.bf16.mxu1 %v1188_v1 }
  0x4d   : > { %553 = vmatpush1.bf16.msra.mxu0 %v1153_v39  ;;  %691 = vmatpush1.bf16.msra.mxu1 %v1154_v40 }
  0x4e   : > { %554 = vmatprep.subr.bf16.mxu0 %v1188_v1  ;;  %692 = vmatprep.subr.bf16.mxu1 %v1188_v1 }
  0x51   : > { %555 = vmatpush1.bf16.msra.mxu0 %v1155_v41  ;;  %693 = vmatpush1.bf16.msra.mxu1 %v1156_v42 }
  0x52   : > { %568 = vmatprep.subr.bf16.mxu0 %v1188_v1  ;;  %706 = vmatprep.subr.bf16.mxu1 %v1188_v1 }
  0x55   : > { %569 = vmatpush2.bf16.msra.mxu0 %v1157_v43  ;;  %707 = vmatpush2.bf16.msra.mxu1 %v1158_v44 }
  0x56   : > { %570 = vmatprep.subr.bf16.mxu0 %v1188_v1  ;;  %708 = vmatprep.subr.bf16.mxu1 %v1188_v1 }
  0x59   : > { %571 = vmatpush2.bf16.msra.mxu0 %v1159_v45  ;;  %709 = vmatpush2.bf16.msra.mxu1 %v1162_v46 }
  0x5a   : > { %816 = vmatprep.subr.bf16.mxu0 %v1188_v1 }
  0x5c   : > { %573 = vmatmul.mubr.bf16.vlgmr.msra.gmra.mxu0 %v1163_v47  ;;  %711 = vmatmul.mubr.bf16.vlgmr.msra.gmra.mxu1 %v1167_v49 }
  0x5d   : > { %817 = vmatpush1.bf16.msra.mxu0 %v1166_v48  ;;  %1096 = vmatprep.mubr.msk.bf16.mxu0 %vm287_vm0, %v1177_v50 }
  0x5e   : > { %818 = vmatprep.subr.bf16.mxu0 %v1188_v1 }
  0x61   : > { %819 = vmatpush1.bf16.msra.mxu0 %v1168_v51 }
  0x62   : > { %820 = vmatprep.subr.bf16.mxu0 %v1188_v1 }
  0x65   : > { %821 = vmatpush1.bf16.msra.mxu0 %v1169_v52 }
  0x66   : > { %822 = vmatprep.subr.bf16.mxu0 %v1188_v1 }
  0x69   : > { %823 = vmatpush1.bf16.msra.mxu0 %v1170_v53 }
  0x6a   : > { %824 = vmatprep.subr.bf16.mxu0 %v1188_v1 }
  0x6d   : > { %825 = vmatpush1.bf16.msra.mxu0 %v1171_v54 }
  0x6e   : > { %826 = vmatprep.subr.bf16.mxu0 %v1188_v1 }
  0x71   : > { %827 = vmatpush1.bf16.msra.mxu0 %v1172_v55 }
  0x72   : > { %828 = vmatprep.subr.bf16.mxu0 %v1188_v1 }
  0x75   : > { %829 = vmatpush1.bf16.msra.mxu0 %v1173_v56 }
  0x76   : > { %830 = vmatprep.subr.bf16.mxu0 %v1188_v1 }
  0x79   : > { %831 = vmatpush1.bf16.msra.mxu0 %v1174_v57 }
  0x7a   : > { %844 = vmatprep.subr.bf16.mxu0 %v1188_v1 }
  0x7d   : > { %845 = vmatpush2.bf16.msra.mxu0 %v1175_v58 }
  0x7e   : > { %846 = vmatprep.subr.bf16.mxu0 %v1188_v1 }
  0x81   : > { %847 = vmatpush2.bf16.msra.mxu0 %v1176_v59 }
  0x84   : > { %849 = vmatmul.mubr.bf16.vlgmr.msra.gmra.mxu0 %v1179_v60 }
  0xf4   : > { %v325_v61 = vpop.f32.mrf.mxu0  ;;  %v438_v62 = vpop.f32.mrf.mxu1 }
  0xf5   : > { %v439_v63 = vadd.f32 %v438_v62, %v325_v61 }
  0xf6   : > { %v327_v0 = vpop.f32.mrf.mxu0  ;;  %v440_v2 = vpop.f32.mrf.mxu1 }
  0xf8   : > { %v328_v3 = vpop.f32.mrf.mxu0  ;;  %v441_v4 = vpop.f32.mrf.mxu1 }
  0xf9   : > { %v442_v5 = vadd.f32 %v441_v4, %v328_v3 }
  0xfa   : > { %v330_v6 = vpop.f32.mrf.mxu0  ;;  %v443_v7 = vpop.f32.mrf.mxu1 }
 0x11c   : > { %v574_v8 = vpop.f32.mrf.mxu0  ;;  %v712_v9 = vpop.f32.mrf.mxu1 }
 0x11d   : > { %v581_v15 = vadd.f32 %v574_v8, %v439_v63 }
 0x11e   : > { %v576_v10 = vpop.f32.mrf.mxu0  ;;  %v714_v11 = vpop.f32.mrf.mxu1 }
 0x11f   : > { %v719_v16 = vadd.f32 %v712_v9, %v581_v15 }
 0x120   : > { %v577_v12 = vpop.f32.mrf.mxu0  ;;  %v715_v1 = vpop.f32.mrf.mxu1 }
 0x121   : > { %v582_v17 = vadd.f32 %v577_v12, %v442_v5 }
 0x122   : > { %v579_v13 = vpop.f32.mrf.mxu0  ;;  %v717_v14 = vpop.f32.mrf.mxu1 }
 0x123   : > { %v720_v22 = vadd.f32 %v715_v1, %v582_v17 }
 0x144   : > { %v850_v18 = vpop.f32.mrf.mxu0 }
 0x145   : > { %v857_v20 = vadd.f32 %v850_v18, %v719_v16 }
 0x146   : > { %v852_v21 = vpop.f32.mrf.mxu0 }
 0x147   : > { %v866_v23 = vadd.f32 %v1097_v19, %v857_v20 }
 0x148   : > { %v853_v24 = vpop.f32.mrf.mxu0 }
 0x149   : > { %vm868_vm1 = vcmp.ge.f32.partialorder %v866_v23, 0.0  ;;  %v870_v25 = vmul.f32 0.1, %v866_v23  ;;  %v858_v26 = vadd.f32 %v853_v24, %v720_v22 }
 0x14a   : > { %v855_v27 = vpop.f32.mrf.mxu0 }
 0x14b   : > { %v872_v28 = vsel %vm868_vm1, %v866_v23, %v870_v25  ;;  %v867_v29 = vadd.f32 %v1097_v19, %v858_v26 }
 0x14c   : > { %v1103_v30 = vpack.c.bf16 %v872_v28, %v872_v28 }
 0x14d   : > { %vm869_vm3 = vcmp.ge.f32.partialorder %v867_v29, 0.0  ;;  %v871_v31 = vmul.f32 0.1, %v867_v29 }
 0x14e   : > { %883 = vst.msk [vmem:[%s170_s25] sm:$0xf] %vm882_vm2, %v1103_v30 }
 0x14f   : > { %v873_v32 = vsel %vm869_vm3, %v867_v29, %v871_v31 }
 0x150   : > { %v1104_v33 = vpack.c.bf16 %v873_v32, %v873_v32 }
 0x152   : > { %884 = vst.msk [vmem:[%s170_s25 + $0x4] sm:$0xf] %vm882_vm2, %v1104_v33 }
 0x153 PF: > { %s13_s12 = sadd.s32 1, %s1186_s12  }
 0x154   : > { %p10_p4 = scmp.ge.s32.totalorder %s13_s12, 4  }
 0x156   :  { %12 = sbr.rel (!%p10_p4) target bundleno = 1 (0x1), region = 67 }

</bundles_post_ra>
